<compile_context>
chip_gen: v5e
topology: v5e:2x2
jax: 0.10.0
libtpu: 0.0.40
codegen_flags: <defaults>
</compile_context>

<pallas_src>
import functools

import jax
import jax.numpy as jnp
import numpy as np
from jax.experimental import pallas as pl
from jax.experimental.pallas import tpu as pltpu

EPS = 1e-5
KH = KW = 3  # conv kernel size


def _round_up(v, m):
    return ((v + m - 1) // m) * m


def _dummy_kernel(cw_ref, x2_ref, fwt_ref, fbcs_ref, o_ref, y_scr, *,
                  cblk, r_out, inv_count):
    """One channel block (cblk conv channels) per grid step.

    cw_ref  : (Cout*9,)           f32  SMEM  flat conv weights (scalar broadcasts)
    x2_ref  : (r_in, wk)          f32  VMEM  all images stacked into one tall padded sheet
    fwt_ref : (wk, o_pad)         bf16 VMEM  fc weight^T, zero-padded rows / cols
    fbcs_ref: (2, o_pad)          f32  VMEM  row0 = fc bias, row1 = colsum(fwt)
    o_ref   : (cblk*r_out, o_pad) bf16 VMEM  this channel block's output slab
    y_scr   : (cblk*r_out, wk)    bf16 VMEM  MXU staging scratch (raw conv activations)
    """
    cb = pl.program_id(0)
    wk = x2_ref.shape[1]

    # Only the 3 row-shifted bases are materialized; column shifts happen on the XLU.
    x2 = x2_ref[...]
    rows = [x2[di:di + r_out, :] for di in range(KH)]

    fb = fbcs_ref[0:1, :]        # (1, o_pad) fc bias
    colsum = fbcs_ref[1:2, :]    # (1, o_pad) per-output column sum of fwt

    stats = []                   # per-local-channel (mean, inv_std), each (1, 1)
    # Static unroll: cblk is small (4) and each channel's big intermediate (acc)
    # dies at the scratch store below, so vreg liveness stays bounded.
    for lc in range(cblk):
        base = (cb * cblk + lc) * (KH * KW)

        # 3x3 conv (bias dropped; cancelled by the BN mean subtraction).  For each
        # column offset dj: combine the 3 row bases with scalar FMAs (VALU), then
        # rotate the combined row left by dj on the XLU.  The rotation wrap only
        # touches zero pad columns, so pad columns of acc stay exactly zero.
        acc = None
        for dj in range(KW):
            comb = rows[0] * cw_ref[base + dj]
            for di in range(1, KH):
                comb = comb + rows[di] * cw_ref[base + di * KW + dj]
            if dj:
                comb = pltpu.roll(comb, shift=wk - dj, axis=1)   # == shift-left by dj
            acc = comb if acc is None else acc + comb

        # Single-pass BatchNorm2d batch statistics.  Pad rows / columns of acc are
        # exactly zero, so full-tile sums equal sums over the valid N*Ho*Wo region.
        s1 = jnp.sum(acc, axis=1, keepdims=True)
        s1 = jnp.sum(s1, axis=0, keepdims=True)                  # (1, 1)
        s2 = jnp.sum(acc * acc, axis=1, keepdims=True)
        s2 = jnp.sum(s2, axis=0, keepdims=True)                  # (1, 1)
        mean = s1 * inv_count
        var = jnp.maximum(s2 * inv_count - mean * mean, 0.0)     # clamp E[x^2]-E[x]^2
        stats.append((mean, jax.lax.rsqrt(var + EPS)))

        # Stream the RAW activations straight into the bf16 staging scratch
        # (no concatenate); BN is folded into the matmul epilogue, so the MXU
        # does not wait on the stat reductions.  All rows / full width are written
        # each grid step, so the scratch needs no pre-zeroing.
        y_scr[lc * r_out:(lc + 1) * r_out, :] = acc.astype(jnp.bfloat16)

    # One tall, K-aligned bf16 MXU matmul for the whole channel block (f32 accum).
    raw = jnp.dot(y_scr[...], fwt_ref[...], preferred_element_type=jnp.float32)

    # Per-channel BN + fc-bias epilogue:
    #   out = inv_std * raw + (fc_b - mean * inv_std * colsum(fwt))
    for lc in range(cblk):
        mean, inv_std = stats[lc]
        off = fb - (mean * inv_std) * colsum                     # (1, o_pad)
        o_ref[lc * r_out:(lc + 1) * r_out, :] = (
            raw[lc * r_out:(lc + 1) * r_out, :] * inv_std + off
        ).astype(o_ref.dtype)


def dummy_model_forward(x, params, *, cblk=4):
    """x: (N, 1, H, W) float32 (NCHW) -> (N, Cout, H+2, fc_out) float32."""
    n, cin, h, w = x.shape
    assert cin == 1
    cout = params["conv_w"].shape[0]
    assert cout % cblk == 0
    n_blocks = cout // cblk                     # keep >= 2 (even preferred for v7x)
    ho, wo = h + 2, w + 2                       # conv output (k=3, s=1, p=2)
    hp, wp = h + 4, w + 4                       # padded input
    o = params["fc_w"].shape[0]
    assert params["fc_w"].shape[1] == wo, "fc in_features must equal W_out (see TODO)"

    o_pad = _round_up(o, 128)                   # lane-dense FC output width
    wk = _round_up(wp, 128)                     # lane-aligned matmul contraction width
    r_out = _round_up(n * hp, 16)               # bf16-tile-aligned tall-sheet rows
    r_in = r_out + 2

    # Pad each image (conv pad=2 plus lane padding to wk) and stack into one tall
    # 2-D sheet.  Per-image top/bottom zero rows keep the vertical taps from mixing
    # neighbouring images; all seam / pad rows and pad columns of the conv result
    # come out exactly zero.
    xpad = jnp.pad(x[:, 0].astype(jnp.float32), ((0, 0), (2, 2), (2, wk - w - 2)))
    x2 = xpad.reshape(n * hp, wk)
    x2 = jnp.pad(x2, ((0, r_in - n * hp), (0, 0)))               # (r_in, wk)

    # Flat 1-D SMEM conv weights; conv bias intentionally not passed — training-mode
    # BN (batch stats, gamma=1, beta=0) cancels it exactly.  This fold is invalid in
    # eval mode or with a learned BN affine.
    cw = params["conv_w"].reshape(cout * KH * KW).astype(jnp.float32)

    fwt = jnp.zeros((wk, o_pad), jnp.bfloat16).at[:wo, :o].set(
        params["fc_w"].T.astype(jnp.bfloat16))
    colsum = jnp.sum(fwt.astype(jnp.float32), axis=0, keepdims=True)   # (1, o_pad)
    fb = jnp.zeros((1, o_pad), jnp.float32).at[:, :o].set(
        params["fc_b"].astype(jnp.float32))
    fbcs = jnp.concatenate([fb, colsum], axis=0)                       # (2, o_pad)

    # Shape-derived VMEM budget: resident sheet + weights + staging scratch +
    # double-buffered bf16 output slab; clamp to v7x's 64 MiB physical VMEM.
    slab = cblk * r_out * o_pad * 2
    est = (2 * r_in * wk * 4) + (2 * wk * o_pad * 2) + (cblk * r_out * wk * 2) \
        + 2 * slab + (1 << 20)
    assert est <= 64 * 1024 * 1024, \
        "working set exceeds v7x VMEM; reduce cblk or row-tile the matmul stage"
    vmem_limit = int(min(max(2 * est, 32 * 1024 * 1024), 64 * 1024 * 1024))

    kernel = functools.partial(_dummy_kernel, cblk=cblk, r_out=r_out,
                               inv_count=1.0 / float(n * ho * wo))

    out = pl.pallas_call(
        kernel,
        out_shape=jax.ShapeDtypeStruct((cout * r_out, o_pad), jnp.bfloat16),
        grid=(n_blocks,),
        in_specs=[
            pl.BlockSpec(memory_space=pltpu.MemorySpace.SMEM),     # cw (flat scalars)
            pl.BlockSpec((r_in, wk), lambda c: (0, 0)),            # resident sheet
            pl.BlockSpec((wk, o_pad), lambda c: (0, 0)),           # fc weight^T
            pl.BlockSpec((2, o_pad), lambda c: (0, 0)),            # fc bias / colsum
        ],
        out_specs=pl.BlockSpec((cblk * r_out, o_pad), lambda c: (c, 0)),
        scratch_shapes=[pltpu.VMEM((cblk * r_out, wk), jnp.bfloat16)],
        compiler_params=pltpu.CompilerParams(
            dimension_semantics=("parallel",),     # channel blocks are independent
            vmem_limit_bytes=vmem_limit,
        ),
    )(cw, x2, fwt, fbcs)

    # Wrapper-side layout plumbing: drop the zero-pad FC lanes, extract the valid
    # rows of the tall sheet and restore the (N, Cout, Ho, O) PyTorch layout.
    out = out.reshape(cout, r_out, o_pad)[:, :n * hp, :]
    out = out.reshape(cout, n, hp, o_pad)[:, :, :ho, :o]
    return out.transpose(1, 0, 2, 3).astype(jnp.float32)


def reference_forward(x, params):
    """Pure-JAX reference of the same forward semantics (keeps the conv bias)."""
    out = jax.lax.conv_general_dilated(
        x, params["conv_w"], window_strides=(1, 1), padding=((2, 2), (2, 2)),
        dimension_numbers=("NCHW", "OIHW", "NCHW"),
        precision=jax.lax.Precision.HIGHEST)
    out = out + params["conv_b"].reshape(1, -1, 1, 1)
    mean = out.mean(axis=(0, 2, 3), keepdims=True)
    var = ((out - mean) ** 2).mean(axis=(0, 2, 3), keepdims=True)
    out = (out - mean) / jnp.sqrt(var + EPS)
    return jnp.einsum("nchw,ow->ncho", out, params["fc_w"],
                      precision=jax.lax.Precision.HIGHEST) + params["fc_b"]


if __name__ == "__main__":
    # Small shapes consistent with the module structure.
    N, H, W = 2, 16, 16
    COUT, FC_OUT = 16, 100
    WOUT = W + 2

    key = jax.random.PRNGKey(0)
    k1, k2, k3, k4, k5 = jax.random.split(key, 5)
    params = {
        "conv_w": jax.random.normal(k1, (COUT, 1, KH, KW), jnp.float32) * 0.2,
        "conv_b": jax.random.normal(k2, (COUT,), jnp.float32) * 0.1,
        "fc_w": jax.random.normal(k3, (FC_OUT, WOUT), jnp.float32) / jnp.sqrt(WOUT),
        "fc_b": jax.random.normal(k4, (FC_OUT,), jnp.float32) * 0.1,
    }
    x = jax.random.normal(k5, (N, 1, H, W), jnp.float32)

    out = jax.block_until_ready(dummy_model_forward(x, params))
    ref = jax.block_until_ready(reference_forward(x, params))

    assert out.shape == (N, COUT, H + 2, FC_OUT), out.shape
    np.testing.assert_allclose(np.asarray(out), np.asarray(ref), rtol=5e-2, atol=5e-2)
    print("KERNEL_OK")
</pallas_src>

<mosaic_0001>
module attributes {stable_mosaic.version = 11 : i64} {
  func.func @_dummy_kernel(%arg0: i32, %arg1: memref<144xf32, #tpu.memory_space<smem>>, %arg2: memref<50x128xf32, #tpu.memory_space<vmem>>, %arg3: memref<128x128xbf16, #tpu.memory_space<vmem>>, %arg4: memref<2x128xf32, #tpu.memory_space<vmem>>, %arg5: memref<192x128xbf16, #tpu.memory_space<vmem>>, %arg6: memref<192x128xbf16, #tpu.memory_space<vmem>>) attributes {dimension_semantics = [#tpu.dimension_semantics<parallel>], iteration_bounds = array<i64: 4>, scalar_prefetch = 0 : i64, scratch_operands = 1 : i64, tpu.core_type = #tpu.core_type<tc>, window_params = [{transform_indices = @transform_0, window_bounds = array<i64: 144>}, {pipeline_mode = #tpu.pipeline_mode<synchronous>, transform_indices = @transform_1, window_bounds = array<i64: 50, 128>}, {pipeline_mode = #tpu.pipeline_mode<synchronous>, transform_indices = @transform_2, window_bounds = array<i64: 128, 128>}, {pipeline_mode = #tpu.pipeline_mode<synchronous>, transform_indices = @transform_3, window_bounds = array<i64: 2, 128>}, {transform_indices = @transform_4, window_bounds = array<i64: 192, 128>}]} {
    %c0 = arith.constant 0 : index
    %c0_0 = arith.constant 0 : index
    %0 = vector.load %arg2[%c0, %c0_0] : memref<50x128xf32, #tpu.memory_space<vmem>>, vector<50x128xf32>
    %1 = vector.extract_strided_slice %0 {offsets = [0, 0], sizes = [48, 128], strides = [1, 1]} : vector<50x128xf32> to vector<48x128xf32>
    %2 = vector.extract_strided_slice %0 {offsets = [1, 0], sizes = [48, 128], strides = [1, 1]} : vector<50x128xf32> to vector<48x128xf32>
    %3 = vector.extract_strided_slice %0 {offsets = [2, 0], sizes = [48, 128], strides = [1, 1]} : vector<50x128xf32> to vector<48x128xf32>
    %c0_1 = arith.constant 0 : index
    %c0_2 = arith.constant 0 : index
    %4 = vector.load %arg4[%c0_1, %c0_2] : memref<2x128xf32, #tpu.memory_space<vmem>>, vector<1x128xf32>
    %c1 = arith.constant 1 : index
    %c0_3 = arith.constant 0 : index
    %5 = vector.load %arg4[%c1, %c0_3] : memref<2x128xf32, #tpu.memory_space<vmem>>, vector<1x128xf32>
    %c4_i32 = arith.constant 4 : i32
    %6 = arith.muli %arg0, %c4_i32 : i32
    %c0_i32 = arith.constant 0 : i32
    %7 = arith.addi %6, %c0_i32 : i32
    %c9_i32 = arith.constant 9 : i32
    %8 = arith.muli %7, %c9_i32 : i32
    %c0_i32_4 = arith.constant 0 : i32
    %9 = arith.addi %8, %c0_i32_4 : i32
    %10 = arith.index_cast %9 : i32 to index
    %11 = memref.load %arg1[%10] : memref<144xf32, #tpu.memory_space<smem>>
    %12 = vector.broadcast %11 : f32 to vector<48x128xf32>
    %13 = arith.mulf %1, %12 : vector<48x128xf32>
    %c3_i32 = arith.constant 3 : i32
    %14 = arith.addi %8, %c3_i32 : i32
    %c0_i32_5 = arith.constant 0 : i32
    %15 = arith.addi %14, %c0_i32_5 : i32
    %16 = arith.index_cast %15 : i32 to index
    %17 = memref.load %arg1[%16] : memref<144xf32, #tpu.memory_space<smem>>
    %18 = vector.broadcast %17 : f32 to vector<48x128xf32>
    %19 = arith.mulf %2, %18 : vector<48x128xf32>
    %20 = arith.addf %13, %19 : vector<48x128xf32>
    %c6_i32 = arith.constant 6 : i32
    %21 = arith.addi %8, %c6_i32 : i32
    %c0_i32_6 = arith.constant 0 : i32
    %22 = arith.addi %21, %c0_i32_6 : i32
    %23 = arith.index_cast %22 : i32 to index
    %24 = memref.load %arg1[%23] : memref<144xf32, #tpu.memory_space<smem>>
    %25 = vector.broadcast %24 : f32 to vector<48x128xf32>
    %26 = arith.mulf %3, %25 : vector<48x128xf32>
    %27 = arith.addf %20, %26 : vector<48x128xf32>
    %c1_i32 = arith.constant 1 : i32
    %28 = arith.addi %8, %c1_i32 : i32
    %29 = arith.index_cast %28 : i32 to index
    %30 = memref.load %arg1[%29] : memref<144xf32, #tpu.memory_space<smem>>
    %31 = vector.broadcast %30 : f32 to vector<48x128xf32>
    %32 = arith.mulf %1, %31 : vector<48x128xf32>
    %c3_i32_7 = arith.constant 3 : i32
    %33 = arith.addi %8, %c3_i32_7 : i32
    %c1_i32_8 = arith.constant 1 : i32
    %34 = arith.addi %33, %c1_i32_8 : i32
    %35 = arith.index_cast %34 : i32 to index
    %36 = memref.load %arg1[%35] : memref<144xf32, #tpu.memory_space<smem>>
    %37 = vector.broadcast %36 : f32 to vector<48x128xf32>
    %38 = arith.mulf %2, %37 : vector<48x128xf32>
    %39 = arith.addf %32, %38 : vector<48x128xf32>
    %c6_i32_9 = arith.constant 6 : i32
    %40 = arith.addi %8, %c6_i32_9 : i32
    %c1_i32_10 = arith.constant 1 : i32
    %41 = arith.addi %40, %c1_i32_10 : i32
    %42 = arith.index_cast %41 : i32 to index
    %43 = memref.load %arg1[%42] : memref<144xf32, #tpu.memory_space<smem>>
    %44 = vector.broadcast %43 : f32 to vector<48x128xf32>
    %45 = arith.mulf %3, %44 : vector<48x128xf32>
    %46 = arith.addf %39, %45 : vector<48x128xf32>
    %c127_i32 = arith.constant 127 : i32
    %47 = tpu.dynamic_rotate %46 by %c127_i32 dim 1 : vector<48x128xf32>, i32 -> vector<48x128xf32>
    %48 = arith.addf %27, %47 : vector<48x128xf32>
    %c2_i32 = arith.constant 2 : i32
    %49 = arith.addi %8, %c2_i32 : i32
    %50 = arith.index_cast %49 : i32 to index
    %51 = memref.load %arg1[%50] : memref<144xf32, #tpu.memory_space<smem>>
    %52 = vector.broadcast %51 : f32 to vector<48x128xf32>
    %53 = arith.mulf %1, %52 : vector<48x128xf32>
    %c3_i32_11 = arith.constant 3 : i32
    %54 = arith.addi %8, %c3_i32_11 : i32
    %c2_i32_12 = arith.constant 2 : i32
    %55 = arith.addi %54, %c2_i32_12 : i32
    %56 = arith.index_cast %55 : i32 to index
    %57 = memref.load %arg1[%56] : memref<144xf32, #tpu.memory_space<smem>>
    %58 = vector.broadcast %57 : f32 to vector<48x128xf32>
    %59 = arith.mulf %2, %58 : vector<48x128xf32>
    %60 = arith.addf %53, %59 : vector<48x128xf32>
    %c6_i32_13 = arith.constant 6 : i32
    %61 = arith.addi %8, %c6_i32_13 : i32
    %c2_i32_14 = arith.constant 2 : i32
    %62 = arith.addi %61, %c2_i32_14 : i32
    %63 = arith.index_cast %62 : i32 to index
    %64 = memref.load %arg1[%63] : memref<144xf32, #tpu.memory_space<smem>>
    %65 = vector.broadcast %64 : f32 to vector<48x128xf32>
    %66 = arith.mulf %3, %65 : vector<48x128xf32>
    %67 = arith.addf %60, %66 : vector<48x128xf32>
    %c126_i32 = arith.constant 126 : i32
    %68 = tpu.dynamic_rotate %67 by %c126_i32 dim 1 : vector<48x128xf32>, i32 -> vector<48x128xf32>
    %69 = arith.addf %48, %68 : vector<48x128xf32>
    %cst = arith.constant dense<0.000000e+00> : vector<48xf32>
    %70 = vector.multi_reduction <add>, %69, %cst [1] : vector<48x128xf32> to vector<48xf32>
    %71 = vector.shape_cast %70 : vector<48xf32> to vector<48x1xf32>
    %cst_15 = arith.constant dense<0.000000e+00> : vector<1xf32>
    %72 = vector.multi_reduction <add>, %71, %cst_15 [0] : vector<48x1xf32> to vector<1xf32>
    %73 = vector.shape_cast %72 : vector<1xf32> to vector<1x1xf32>
    %74 = arith.mulf %69, %69 : vector<48x128xf32>
    %cst_16 = arith.constant dense<0.000000e+00> : vector<48xf32>
    %75 = vector.multi_reduction <add>, %74, %cst_16 [1] : vector<48x128xf32> to vector<48xf32>
    %76 = vector.shape_cast %75 : vector<48xf32> to vector<48x1xf32>
    %cst_17 = arith.constant dense<0.000000e+00> : vector<1xf32>
    %77 = vector.multi_reduction <add>, %76, %cst_17 [0] : vector<48x1xf32> to vector<1xf32>
    %78 = vector.shape_cast %77 : vector<1xf32> to vector<1x1xf32>
    %cst_18 = arith.constant 0.00154320989 : f32
    %79 = vector.broadcast %cst_18 : f32 to vector<1x1xf32>
    %80 = arith.mulf %73, %79 : vector<1x1xf32>
    %cst_19 = arith.constant 0.00154320989 : f32
    %81 = vector.broadcast %cst_19 : f32 to vector<1x1xf32>
    %82 = arith.mulf %78, %81 : vector<1x1xf32>
    %83 = arith.mulf %80, %80 : vector<1x1xf32>
    %84 = arith.subf %82, %83 : vector<1x1xf32>
    %cst_20 = arith.constant 0.000000e+00 : f32
    %85 = vector.broadcast %cst_20 : f32 to vector<1x1xf32>
    %86 = arith.maximumf %84, %85 : vector<1x1xf32>
    %cst_21 = arith.constant 9.99999974E-6 : f32
    %87 = vector.broadcast %cst_21 : f32 to vector<1x1xf32>
    %88 = arith.addf %86, %87 : vector<1x1xf32>
    %89 = math.rsqrt %88 : vector<1x1xf32>
    %90 = arith.truncf %69 : vector<48x128xf32> to vector<48x128xbf16>
    %c0_22 = arith.constant 0 : index
    %c0_23 = arith.constant 0 : index
    %91 = vector.load %arg6[%c0_22, %c0_23] : memref<192x128xbf16, #tpu.memory_space<vmem>>, vector<48x128xbf16>
    tpu.vector_store %arg6[%c0_22, %c0_23], %90 {strides = array<i32>} : memref<192x128xbf16, #tpu.memory_space<vmem>>, vector<48x128xbf16>,
    %c4_i32_24 = arith.constant 4 : i32
    %92 = arith.muli %arg0, %c4_i32_24 : i32
    %c1_i32_25 = arith.constant 1 : i32
    %93 = arith.addi %92, %c1_i32_25 : i32
    %c9_i32_26 = arith.constant 9 : i32
    %94 = arith.muli %93, %c9_i32_26 : i32
    %c0_i32_27 = arith.constant 0 : i32
    %95 = arith.addi %94, %c0_i32_27 : i32
    %96 = arith.index_cast %95 : i32 to index
    %97 = memref.load %arg1[%96] : memref<144xf32, #tpu.memory_space<smem>>
    %98 = vector.broadcast %97 : f32 to vector<48x128xf32>
    %99 = arith.mulf %1, %98 : vector<48x128xf32>
    %c3_i32_28 = arith.constant 3 : i32
    %100 = arith.addi %94, %c3_i32_28 : i32
    %c0_i32_29 = arith.constant 0 : i32
    %101 = arith.addi %100, %c0_i32_29 : i32
    %102 = arith.index_cast %101 : i32 to index
    %103 = memref.load %arg1[%102] : memref<144xf32, #tpu.memory_space<smem>>
    %104 = vector.broadcast %103 : f32 to vector<48x128xf32>
    %105 = arith.mulf %2, %104 : vector<48x128xf32>
    %106 = arith.addf %99, %105 : vector<48x128xf32>
    %c6_i32_30 = arith.constant 6 : i32
    %107 = arith.addi %94, %c6_i32_30 : i32
    %c0_i32_31 = arith.constant 0 : i32
    %108 = arith.addi %107, %c0_i32_31 : i32
    %109 = arith.index_cast %108 : i32 to index
    %110 = memref.load %arg1[%109] : memref<144xf32, #tpu.memory_space<smem>>
    %111 = vector.broadcast %110 : f32 to vector<48x128xf32>
    %112 = arith.mulf %3, %111 : vector<48x128xf32>
    %113 = arith.addf %106, %112 : vector<48x128xf32>
    %c1_i32_32 = arith.constant 1 : i32
    %114 = arith.addi %94, %c1_i32_32 : i32
    %115 = arith.index_cast %114 : i32 to index
    %116 = memref.load %arg1[%115] : memref<144xf32, #tpu.memory_space<smem>>
    %117 = vector.broadcast %116 : f32 to vector<48x128xf32>
    %118 = arith.mulf %1, %117 : vector<48x128xf32>
    %c3_i32_33 = arith.constant 3 : i32
    %119 = arith.addi %94, %c3_i32_33 : i32
    %c1_i32_34 = arith.constant 1 : i32
    %120 = arith.addi %119, %c1_i32_34 : i32
    %121 = arith.index_cast %120 : i32 to index
    %122 = memref.load %arg1[%121] : memref<144xf32, #tpu.memory_space<smem>>
    %123 = vector.broadcast %122 : f32 to vector<48x128xf32>
    %124 = arith.mulf %2, %123 : vector<48x128xf32>
    %125 = arith.addf %118, %124 : vector<48x128xf32>
    %c6_i32_35 = arith.constant 6 : i32
    %126 = arith.addi %94, %c6_i32_35 : i32
    %c1_i32_36 = arith.constant 1 : i32
    %127 = arith.addi %126, %c1_i32_36 : i32
    %128 = arith.index_cast %127 : i32 to index
    %129 = memref.load %arg1[%128] : memref<144xf32, #tpu.memory_space<smem>>
    %130 = vector.broadcast %129 : f32 to vector<48x128xf32>
    %131 = arith.mulf %3, %130 : vector<48x128xf32>
    %132 = arith.addf %125, %131 : vector<48x128xf32>
    %c127_i32_37 = arith.constant 127 : i32
    %133 = tpu.dynamic_rotate %132 by %c127_i32_37 dim 1 : vector<48x128xf32>, i32 -> vector<48x128xf32>
    %134 = arith.addf %113, %133 : vector<48x128xf32>
    %c2_i32_38 = arith.constant 2 : i32
    %135 = arith.addi %94, %c2_i32_38 : i32
    %136 = arith.index_cast %135 : i32 to index
    %137 = memref.load %arg1[%136] : memref<144xf32, #tpu.memory_space<smem>>
    %138 = vector.broadcast %137 : f32 to vector<48x128xf32>
    %139 = arith.mulf %1, %138 : vector<48x128xf32>
    %c3_i32_39 = arith.constant 3 : i32
    %140 = arith.addi %94, %c3_i32_39 : i32
    %c2_i32_40 = arith.constant 2 : i32
    %141 = arith.addi %140, %c2_i32_40 : i32
    %142 = arith.index_cast %141 : i32 to index
    %143 = memref.load %arg1[%142] : memref<144xf32, #tpu.memory_space<smem>>
    %144 = vector.broadcast %143 : f32 to vector<48x128xf32>
    %145 = arith.mulf %2, %144 : vector<48x128xf32>
    %146 = arith.addf %139, %145 : vector<48x128xf32>
    %c6_i32_41 = arith.constant 6 : i32
    %147 = arith.addi %94, %c6_i32_41 : i32
    %c2_i32_42 = arith.constant 2 : i32
    %148 = arith.addi %147, %c2_i32_42 : i32
    %149 = arith.index_cast %148 : i32 to index
    %150 = memref.load %arg1[%149] : memref<144xf32, #tpu.memory_space<smem>>
    %151 = vector.broadcast %150 : f32 to vector<48x128xf32>
    %152 = arith.mulf %3, %151 : vector<48x128xf32>
    %153 = arith.addf %146, %152 : vector<48x128xf32>
    %c126_i32_43 = arith.constant 126 : i32
    %154 = tpu.dynamic_rotate %153 by %c126_i32_43 dim 1 : vector<48x128xf32>, i32 -> vector<48x128xf32>
    %155 = arith.addf %134, %154 : vector<48x128xf32>
    %cst_44 = arith.constant dense<0.000000e+00> : vector<48xf32>
    %156 = vector.multi_reduction <add>, %155, %cst_44 [1] : vector<48x128xf32> to vector<48xf32>
    %157 = vector.shape_cast %156 : vector<48xf32> to vector<48x1xf32>
    %cst_45 = arith.constant dense<0.000000e+00> : vector<1xf32>
    %158 = vector.multi_reduction <add>, %157, %cst_45 [0] : vector<48x1xf32> to vector<1xf32>
    %159 = vector.shape_cast %158 : vector<1xf32> to vector<1x1xf32>
    %160 = arith.mulf %155, %155 : vector<48x128xf32>
    %cst_46 = arith.constant dense<0.000000e+00> : vector<48xf32>
    %161 = vector.multi_reduction <add>, %160, %cst_46 [1] : vector<48x128xf32> to vector<48xf32>
    %162 = vector.shape_cast %161 : vector<48xf32> to vector<48x1xf32>
    %cst_47 = arith.constant dense<0.000000e+00> : vector<1xf32>
    %163 = vector.multi_reduction <add>, %162, %cst_47 [0] : vector<48x1xf32> to vector<1xf32>
    %164 = vector.shape_cast %163 : vector<1xf32> to vector<1x1xf32>
    %cst_48 = arith.constant 0.00154320989 : f32
    %165 = vector.broadcast %cst_48 : f32 to vector<1x1xf32>
    %166 = arith.mulf %159, %165 : vector<1x1xf32>
    %cst_49 = arith.constant 0.00154320989 : f32
    %167 = vector.broadcast %cst_49 : f32 to vector<1x1xf32>
    %168 = arith.mulf %164, %167 : vector<1x1xf32>
    %169 = arith.mulf %166, %166 : vector<1x1xf32>
    %170 = arith.subf %168, %169 : vector<1x1xf32>
    %cst_50 = arith.constant 0.000000e+00 : f32
    %171 = vector.broadcast %cst_50 : f32 to vector<1x1xf32>
    %172 = arith.maximumf %170, %171 : vector<1x1xf32>
    %cst_51 = arith.constant 9.99999974E-6 : f32
    %173 = vector.broadcast %cst_51 : f32 to vector<1x1xf32>
    %174 = arith.addf %172, %173 : vector<1x1xf32>
    %175 = math.rsqrt %174 : vector<1x1xf32>
    %176 = arith.truncf %155 : vector<48x128xf32> to vector<48x128xbf16>
    %c48 = arith.constant 48 : index
    %c0_52 = arith.constant 0 : index
    %177 = vector.load %arg6[%c48, %c0_52] : memref<192x128xbf16, #tpu.memory_space<vmem>>, vector<48x128xbf16>
    tpu.vector_store %arg6[%c48, %c0_52], %176 {strides = array<i32>} : memref<192x128xbf16, #tpu.memory_space<vmem>>, vector<48x128xbf16>,
    %c4_i32_53 = arith.constant 4 : i32
    %178 = arith.muli %arg0, %c4_i32_53 : i32
    %c2_i32_54 = arith.constant 2 : i32
    %179 = arith.addi %178, %c2_i32_54 : i32
    %c9_i32_55 = arith.constant 9 : i32
    %180 = arith.muli %179, %c9_i32_55 : i32
    %c0_i32_56 = arith.constant 0 : i32
    %181 = arith.addi %180, %c0_i32_56 : i32
    %182 = arith.index_cast %181 : i32 to index
    %183 = memref.load %arg1[%182] : memref<144xf32, #tpu.memory_space<smem>>
    %184 = vector.broadcast %183 : f32 to vector<48x128xf32>
    %185 = arith.mulf %1, %184 : vector<48x128xf32>
    %c3_i32_57 = arith.constant 3 : i32
    %186 = arith.addi %180, %c3_i32_57 : i32
    %c0_i32_58 = arith.constant 0 : i32
    %187 = arith.addi %186, %c0_i32_58 : i32
    %188 = arith.index_cast %187 : i32 to index
    %189 = memref.load %arg1[%188] : memref<144xf32, #tpu.memory_space<smem>>
    %190 = vector.broadcast %189 : f32 to vector<48x128xf32>
    %191 = arith.mulf %2, %190 : vector<48x128xf32>
    %192 = arith.addf %185, %191 : vector<48x128xf32>
    %c6_i32_59 = arith.constant 6 : i32
    %193 = arith.addi %180, %c6_i32_59 : i32
    %c0_i32_60 = arith.constant 0 : i32
    %194 = arith.addi %193, %c0_i32_60 : i32
    %195 = arith.index_cast %194 : i32 to index
    %196 = memref.load %arg1[%195] : memref<144xf32, #tpu.memory_space<smem>>
    %197 = vector.broadcast %196 : f32 to vector<48x128xf32>
    %198 = arith.mulf %3, %197 : vector<48x128xf32>
    %199 = arith.addf %192, %198 : vector<48x128xf32>
    %c1_i32_61 = arith.constant 1 : i32
    %200 = arith.addi %180, %c1_i32_61 : i32
    %201 = arith.index_cast %200 : i32 to index
    %202 = memref.load %arg1[%201] : memref<144xf32, #tpu.memory_space<smem>>
    %203 = vector.broadcast %202 : f32 to vector<48x128xf32>
    %204 = arith.mulf %1, %203 : vector<48x128xf32>
    %c3_i32_62 = arith.constant 3 : i32
    %205 = arith.addi %180, %c3_i32_62 : i32
    %c1_i32_63 = arith.constant 1 : i32
    %206 = arith.addi %205, %c1_i32_63 : i32
    %207 = arith.index_cast %206 : i32 to index
    %208 = memref.load %arg1[%207] : memref<144xf32, #tpu.memory_space<smem>>
    %209 = vector.broadcast %208 : f32 to vector<48x128xf32>
    %210 = arith.mulf %2, %209 : vector<48x128xf32>
    %211 = arith.addf %204, %210 : vector<48x128xf32>
    %c6_i32_64 = arith.constant 6 : i32
    %212 = arith.addi %180, %c6_i32_64 : i32
    %c1_i32_65 = arith.constant 1 : i32
    %213 = arith.addi %212, %c1_i32_65 : i32
    %214 = arith.index_cast %213 : i32 to index
    %215 = memref.load %arg1[%214] : memref<144xf32, #tpu.memory_space<smem>>
    %216 = vector.broadcast %215 : f32 to vector<48x128xf32>
    %217 = arith.mulf %3, %216 : vector<48x128xf32>
    %218 = arith.addf %211, %217 : vector<48x128xf32>
    %c127_i32_66 = arith.constant 127 : i32
    %219 = tpu.dynamic_rotate %218 by %c127_i32_66 dim 1 : vector<48x128xf32>, i32 -> vector<48x128xf32>
    %220 = arith.addf %199, %219 : vector<48x128xf32>
    %c2_i32_67 = arith.constant 2 : i32
    %221 = arith.addi %180, %c2_i32_67 : i32
    %222 = arith.index_cast %221 : i32 to index
    %223 = memref.load %arg1[%222] : memref<144xf32, #tpu.memory_space<smem>>
    %224 = vector.broadcast %223 : f32 to vector<48x128xf32>
    %225 = arith.mulf %1, %224 : vector<48x128xf32>
    %c3_i32_68 = arith.constant 3 : i32
    %226 = arith.addi %180, %c3_i32_68 : i32
    %c2_i32_69 = arith.constant 2 : i32
    %227 = arith.addi %226, %c2_i32_69 : i32
    %228 = arith.index_cast %227 : i32 to index
    %229 = memref.load %arg1[%228] : memref<144xf32, #tpu.memory_space<smem>>
    %230 = vector.broadcast %229 : f32 to vector<48x128xf32>
    %231 = arith.mulf %2, %230 : vector<48x128xf32>
    %232 = arith.addf %225, %231 : vector<48x128xf32>
    %c6_i32_70 = arith.constant 6 : i32
    %233 = arith.addi %180, %c6_i32_70 : i32
    %c2_i32_71 = arith.constant 2 : i32
    %234 = arith.addi %233, %c2_i32_71 : i32
    %235 = arith.index_cast %234 : i32 to index
    %236 = memref.load %arg1[%235] : memref<144xf32, #tpu.memory_space<smem>>
    %237 = vector.broadcast %236 : f32 to vector<48x128xf32>
    %238 = arith.mulf %3, %237 : vector<48x128xf32>
    %239 = arith.addf %232, %238 : vector<48x128xf32>
    %c126_i32_72 = arith.constant 126 : i32
    %240 = tpu.dynamic_rotate %239 by %c126_i32_72 dim 1 : vector<48x128xf32>, i32 -> vector<48x128xf32>
    %241 = arith.addf %220, %240 : vector<48x128xf32>
    %cst_73 = arith.constant dense<0.000000e+00> : vector<48xf32>
    %242 = vector.multi_reduction <add>, %241, %cst_73 [1] : vector<48x128xf32> to vector<48xf32>
    %243 = vector.shape_cast %242 : vector<48xf32> to vector<48x1xf32>
    %cst_74 = arith.constant dense<0.000000e+00> : vector<1xf32>
    %244 = vector.multi_reduction <add>, %243, %cst_74 [0] : vector<48x1xf32> to vector<1xf32>
    %245 = vector.shape_cast %244 : vector<1xf32> to vector<1x1xf32>
    %246 = arith.mulf %241, %241 : vector<48x128xf32>
    %cst_75 = arith.constant dense<0.000000e+00> : vector<48xf32>
    %247 = vector.multi_reduction <add>, %246, %cst_75 [1] : vector<48x128xf32> to vector<48xf32>
    %248 = vector.shape_cast %247 : vector<48xf32> to vector<48x1xf32>
    %cst_76 = arith.constant dense<0.000000e+00> : vector<1xf32>
    %249 = vector.multi_reduction <add>, %248, %cst_76 [0] : vector<48x1xf32> to vector<1xf32>
    %250 = vector.shape_cast %249 : vector<1xf32> to vector<1x1xf32>
    %cst_77 = arith.constant 0.00154320989 : f32
    %251 = vector.broadcast %cst_77 : f32 to vector<1x1xf32>
    %252 = arith.mulf %245, %251 : vector<1x1xf32>
    %cst_78 = arith.constant 0.00154320989 : f32
    %253 = vector.broadcast %cst_78 : f32 to vector<1x1xf32>
    %254 = arith.mulf %250, %253 : vector<1x1xf32>
    %255 = arith.mulf %252, %252 : vector<1x1xf32>
    %256 = arith.subf %254, %255 : vector<1x1xf32>
    %cst_79 = arith.constant 0.000000e+00 : f32
    %257 = vector.broadcast %cst_79 : f32 to vector<1x1xf32>
    %258 = arith.maximumf %256, %257 : vector<1x1xf32>
    %cst_80 = arith.constant 9.99999974E-6 : f32
    %259 = vector.broadcast %cst_80 : f32 to vector<1x1xf32>
    %260 = arith.addf %258, %259 : vector<1x1xf32>
    %261 = math.rsqrt %260 : vector<1x1xf32>
    %262 = arith.truncf %241 : vector<48x128xf32> to vector<48x128xbf16>
    %c96 = arith.constant 96 : index
    %c0_81 = arith.constant 0 : index
    %263 = vector.load %arg6[%c96, %c0_81] : memref<192x128xbf16, #tpu.memory_space<vmem>>, vector<48x128xbf16>
    tpu.vector_store %arg6[%c96, %c0_81], %262 {strides = array<i32>} : memref<192x128xbf16, #tpu.memory_space<vmem>>, vector<48x128xbf16>,
    %c4_i32_82 = arith.constant 4 : i32
    %264 = arith.muli %arg0, %c4_i32_82 : i32
    %c3_i32_83 = arith.constant 3 : i32
    %265 = arith.addi %264, %c3_i32_83 : i32
    %c9_i32_84 = arith.constant 9 : i32
    %266 = arith.muli %265, %c9_i32_84 : i32
    %c0_i32_85 = arith.constant 0 : i32
    %267 = arith.addi %266, %c0_i32_85 : i32
    %268 = arith.index_cast %267 : i32 to index
    %269 = memref.load %arg1[%268] : memref<144xf32, #tpu.memory_space<smem>>
    %270 = vector.broadcast %269 : f32 to vector<48x128xf32>
    %271 = arith.mulf %1, %270 : vector<48x128xf32>
    %c3_i32_86 = arith.constant 3 : i32
    %272 = arith.addi %266, %c3_i32_86 : i32
    %c0_i32_87 = arith.constant 0 : i32
    %273 = arith.addi %272, %c0_i32_87 : i32
    %274 = arith.index_cast %273 : i32 to index
    %275 = memref.load %arg1[%274] : memref<144xf32, #tpu.memory_space<smem>>
    %276 = vector.broadcast %275 : f32 to vector<48x128xf32>
    %277 = arith.mulf %2, %276 : vector<48x128xf32>
    %278 = arith.addf %271, %277 : vector<48x128xf32>
    %c6_i32_88 = arith.constant 6 : i32
    %279 = arith.addi %266, %c6_i32_88 : i32
    %c0_i32_89 = arith.constant 0 : i32
    %280 = arith.addi %279, %c0_i32_89 : i32
    %281 = arith.index_cast %280 : i32 to index
    %282 = memref.load %arg1[%281] : memref<144xf32, #tpu.memory_space<smem>>
    %283 = vector.broadcast %282 : f32 to vector<48x128xf32>
    %284 = arith.mulf %3, %283 : vector<48x128xf32>
    %285 = arith.addf %278, %284 : vector<48x128xf32>
    %c1_i32_90 = arith.constant 1 : i32
    %286 = arith.addi %266, %c1_i32_90 : i32
    %287 = arith.index_cast %286 : i32 to index
    %288 = memref.load %arg1[%287] : memref<144xf32, #tpu.memory_space<smem>>
    %289 = vector.broadcast %288 : f32 to vector<48x128xf32>
    %290 = arith.mulf %1, %289 : vector<48x128xf32>
    %c3_i32_91 = arith.constant 3 : i32
    %291 = arith.addi %266, %c3_i32_91 : i32
    %c1_i32_92 = arith.constant 1 : i32
    %292 = arith.addi %291, %c1_i32_92 : i32
    %293 = arith.index_cast %292 : i32 to index
    %294 = memref.load %arg1[%293] : memref<144xf32, #tpu.memory_space<smem>>
    %295 = vector.broadcast %294 : f32 to vector<48x128xf32>
    %296 = arith.mulf %2, %295 : vector<48x128xf32>
    %297 = arith.addf %290, %296 : vector<48x128xf32>
    %c6_i32_93 = arith.constant 6 : i32
    %298 = arith.addi %266, %c6_i32_93 : i32
    %c1_i32_94 = arith.constant 1 : i32
    %299 = arith.addi %298, %c1_i32_94 : i32
    %300 = arith.index_cast %299 : i32 to index
    %301 = memref.load %arg1[%300] : memref<144xf32, #tpu.memory_space<smem>>
    %302 = vector.broadcast %301 : f32 to vector<48x128xf32>
    %303 = arith.mulf %3, %302 : vector<48x128xf32>
    %304 = arith.addf %297, %303 : vector<48x128xf32>
    %c127_i32_95 = arith.constant 127 : i32
    %305 = tpu.dynamic_rotate %304 by %c127_i32_95 dim 1 : vector<48x128xf32>, i32 -> vector<48x128xf32>
    %306 = arith.addf %285, %305 : vector<48x128xf32>
    %c2_i32_96 = arith.constant 2 : i32
    %307 = arith.addi %266, %c2_i32_96 : i32
    %308 = arith.index_cast %307 : i32 to index
    %309 = memref.load %arg1[%308] : memref<144xf32, #tpu.memory_space<smem>>
    %310 = vector.broadcast %309 : f32 to vector<48x128xf32>
    %311 = arith.mulf %1, %310 : vector<48x128xf32>
    %c3_i32_97 = arith.constant 3 : i32
    %312 = arith.addi %266, %c3_i32_97 : i32
    %c2_i32_98 = arith.constant 2 : i32
    %313 = arith.addi %312, %c2_i32_98 : i32
    %314 = arith.index_cast %313 : i32 to index
    %315 = memref.load %arg1[%314] : memref<144xf32, #tpu.memory_space<smem>>
    %316 = vector.broadcast %315 : f32 to vector<48x128xf32>
    %317 = arith.mulf %2, %316 : vector<48x128xf32>
    %318 = arith.addf %311, %317 : vector<48x128xf32>
    %c6_i32_99 = arith.constant 6 : i32
    %319 = arith.addi %266, %c6_i32_99 : i32
    %c2_i32_100 = arith.constant 2 : i32
    %320 = arith.addi %319, %c2_i32_100 : i32
    %321 = arith.index_cast %320 : i32 to index
    %322 = memref.load %arg1[%321] : memref<144xf32, #tpu.memory_space<smem>>
    %323 = vector.broadcast %322 : f32 to vector<48x128xf32>
    %324 = arith.mulf %3, %323 : vector<48x128xf32>
    %325 = arith.addf %318, %324 : vector<48x128xf32>
    %c126_i32_101 = arith.constant 126 : i32
    %326 = tpu.dynamic_rotate %325 by %c126_i32_101 dim 1 : vector<48x128xf32>, i32 -> vector<48x128xf32>
    %327 = arith.addf %306, %326 : vector<48x128xf32>
    %cst_102 = arith.constant dense<0.000000e+00> : vector<48xf32>
    %328 = vector.multi_reduction <add>, %327, %cst_102 [1] : vector<48x128xf32> to vector<48xf32>
    %329 = vector.shape_cast %328 : vector<48xf32> to vector<48x1xf32>
    %cst_103 = arith.constant dense<0.000000e+00> : vector<1xf32>
    %330 = vector.multi_reduction <add>, %329, %cst_103 [0] : vector<48x1xf32> to vector<1xf32>
    %331 = vector.shape_cast %330 : vector<1xf32> to vector<1x1xf32>
    %332 = arith.mulf %327, %327 : vector<48x128xf32>
    %cst_104 = arith.constant dense<0.000000e+00> : vector<48xf32>
    %333 = vector.multi_reduction <add>, %332, %cst_104 [1] : vector<48x128xf32> to vector<48xf32>
    %334 = vector.shape_cast %333 : vector<48xf32> to vector<48x1xf32>
    %cst_105 = arith.constant dense<0.000000e+00> : vector<1xf32>
    %335 = vector.multi_reduction <add>, %334, %cst_105 [0] : vector<48x1xf32> to vector<1xf32>
    %336 = vector.shape_cast %335 : vector<1xf32> to vector<1x1xf32>
    %cst_106 = arith.constant 0.00154320989 : f32
    %337 = vector.broadcast %cst_106 : f32 to vector<1x1xf32>
    %338 = arith.mulf %331, %337 : vector<1x1xf32>
    %cst_107 = arith.constant 0.00154320989 : f32
    %339 = vector.broadcast %cst_107 : f32 to vector<1x1xf32>
    %340 = arith.mulf %336, %339 : vector<1x1xf32>
    %341 = arith.mulf %338, %338 : vector<1x1xf32>
    %342 = arith.subf %340, %341 : vector<1x1xf32>
    %cst_108 = arith.constant 0.000000e+00 : f32
    %343 = vector.broadcast %cst_108 : f32 to vector<1x1xf32>
    %344 = arith.maximumf %342, %343 : vector<1x1xf32>
    %cst_109 = arith.constant 9.99999974E-6 : f32
    %345 = vector.broadcast %cst_109 : f32 to vector<1x1xf32>
    %346 = arith.addf %344, %345 : vector<1x1xf32>
    %347 = math.rsqrt %346 : vector<1x1xf32>
    %348 = arith.truncf %327 : vector<48x128xf32> to vector<48x128xbf16>
    %c144 = arith.constant 144 : index
    %c0_110 = arith.constant 0 : index
    %349 = vector.load %arg6[%c144, %c0_110] : memref<192x128xbf16, #tpu.memory_space<vmem>>, vector<48x128xbf16>
    tpu.vector_store %arg6[%c144, %c0_110], %348 {strides = array<i32>} : memref<192x128xbf16, #tpu.memory_space<vmem>>, vector<48x128xbf16>,
    %c0_111 = arith.constant 0 : index
    %c0_112 = arith.constant 0 : index
    %350 = vector.load %arg6[%c0_111, %c0_112] : memref<192x128xbf16, #tpu.memory_space<vmem>>, vector<192x128xbf16>
    %c0_113 = arith.constant 0 : index
    %c0_114 = arith.constant 0 : index
    %351 = vector.load %arg3[%c0_113, %c0_114] : memref<128x128xbf16, #tpu.memory_space<vmem>>, vector<128x128xbf16>
    %cst_115 = arith.constant dense<0.000000e+00> : vector<192x128xf32>
    %352 = tpu.matmul %350, %351, %cst_115 {dimension_numbers = #tpu.dot_dimension_numbers<[1], [0], [0], [1], [0, 0, 1, 1], [], []>} : vector<192x128xbf16>, vector<128x128xbf16>, vector<192x128xf32> -> vector<192x128xf32>
    %353 = arith.mulf %80, %89 : vector<1x1xf32>
    %354 = vector.broadcast %353 : vector<1x1xf32> to vector<1x128xf32>
    %355 = arith.mulf %354, %5 : vector<1x128xf32>
    %356 = arith.subf %4, %355 : vector<1x128xf32>
    %357 = vector.extract_strided_slice %352 {offsets = [0, 0], sizes = [48, 128], strides = [1, 1]} : vector<192x128xf32> to vector<48x128xf32>
    %358 = vector.broadcast %89 : vector<1x1xf32> to vector<48x128xf32>
    %359 = arith.mulf %357, %358 : vector<48x128xf32>
    %360 = vector.broadcast %356 : vector<1x128xf32> to vector<48x128xf32>
    %361 = arith.addf %359, %360 : vector<48x128xf32>
    %362 = arith.truncf %361 : vector<48x128xf32> to vector<48x128xbf16>
    %c0_116 = arith.constant 0 : index
    %c0_117 = arith.constant 0 : index
    %363 = vector.load %arg5[%c0_116, %c0_117] : memref<192x128xbf16, #tpu.memory_space<vmem>>, vector<48x128xbf16>
    tpu.vector_store %arg5[%c0_116, %c0_117], %362 {strides = array<i32>} : memref<192x128xbf16, #tpu.memory_space<vmem>>, vector<48x128xbf16>,
    %364 = arith.mulf %166, %175 : vector<1x1xf32>
    %365 = vector.broadcast %364 : vector<1x1xf32> to vector<1x128xf32>
    %366 = arith.mulf %365, %5 : vector<1x128xf32>
    %367 = arith.subf %4, %366 : vector<1x128xf32>
    %368 = vector.extract_strided_slice %352 {offsets = [48, 0], sizes = [48, 128], strides = [1, 1]} : vector<192x128xf32> to vector<48x128xf32>
    %369 = vector.broadcast %175 : vector<1x1xf32> to vector<48x128xf32>
    %370 = arith.mulf %368, %369 : vector<48x128xf32>
    %371 = vector.broadcast %367 : vector<1x128xf32> to vector<48x128xf32>
    %372 = arith.addf %370, %371 : vector<48x128xf32>
    %373 = arith.truncf %372 : vector<48x128xf32> to vector<48x128xbf16>
    %c48_118 = arith.constant 48 : index
    %c0_119 = arith.constant 0 : index
    %374 = vector.load %arg5[%c48_118, %c0_119] : memref<192x128xbf16, #tpu.memory_space<vmem>>, vector<48x128xbf16>
    tpu.vector_store %arg5[%c48_118, %c0_119], %373 {strides = array<i32>} : memref<192x128xbf16, #tpu.memory_space<vmem>>, vector<48x128xbf16>,
    %375 = arith.mulf %252, %261 : vector<1x1xf32>
    %376 = vector.broadcast %375 : vector<1x1xf32> to vector<1x128xf32>
    %377 = arith.mulf %376, %5 : vector<1x128xf32>
    %378 = arith.subf %4, %377 : vector<1x128xf32>
    %379 = vector.extract_strided_slice %352 {offsets = [96, 0], sizes = [48, 128], strides = [1, 1]} : vector<192x128xf32> to vector<48x128xf32>
    %380 = vector.broadcast %261 : vector<1x1xf32> to vector<48x128xf32>
    %381 = arith.mulf %379, %380 : vector<48x128xf32>
    %382 = vector.broadcast %378 : vector<1x128xf32> to vector<48x128xf32>
    %383 = arith.addf %381, %382 : vector<48x128xf32>
    %384 = arith.truncf %383 : vector<48x128xf32> to vector<48x128xbf16>
    %c96_120 = arith.constant 96 : index
    %c0_121 = arith.constant 0 : index
    %385 = vector.load %arg5[%c96_120, %c0_121] : memref<192x128xbf16, #tpu.memory_space<vmem>>, vector<48x128xbf16>
    tpu.vector_store %arg5[%c96_120, %c0_121], %384 {strides = array<i32>} : memref<192x128xbf16, #tpu.memory_space<vmem>>, vector<48x128xbf16>,
    %386 = arith.mulf %338, %347 : vector<1x1xf32>
    %387 = vector.broadcast %386 : vector<1x1xf32> to vector<1x128xf32>
    %388 = arith.mulf %387, %5 : vector<1x128xf32>
    %389 = arith.subf %4, %388 : vector<1x128xf32>
    %390 = vector.extract_strided_slice %352 {offsets = [144, 0], sizes = [48, 128], strides = [1, 1]} : vector<192x128xf32> to vector<48x128xf32>
    %391 = vector.broadcast %347 : vector<1x1xf32> to vector<48x128xf32>
    %392 = arith.mulf %390, %391 : vector<48x128xf32>
    %393 = vector.broadcast %389 : vector<1x128xf32> to vector<48x128xf32>
    %394 = arith.addf %392, %393 : vector<48x128xf32>
    %395 = arith.truncf %394 : vector<48x128xf32> to vector<48x128xbf16>
    %c144_122 = arith.constant 144 : index
    %c0_123 = arith.constant 0 : index
    %396 = vector.load %arg5[%c144_122, %c0_123] : memref<192x128xbf16, #tpu.memory_space<vmem>>, vector<48x128xbf16>
    tpu.vector_store %arg5[%c144_122, %c0_123], %395 {strides = array<i32>} : memref<192x128xbf16, #tpu.memory_space<vmem>>, vector<48x128xbf16>,
    return
  }
  func.func @transform_0(%arg0: i32) -> i32 {
    %c0_i32 = arith.constant 0 : i32
    %c0_i32_0 = arith.constant 0 : i32
    return %c0_i32 : i32
  }
  func.func @transform_1(%arg0: i32) -> (i32, i32) {
    %c0_i32 = arith.constant 0 : i32
    %c0_i32_0 = arith.constant 0 : i32
    %c0_i32_1 = arith.constant 0 : i32
    return %c0_i32, %c0_i32_0 : i32, i32
  }
  func.func @transform_2(%arg0: i32) -> (i32, i32) {
    %c0_i32 = arith.constant 0 : i32
    %c0_i32_0 = arith.constant 0 : i32
    %c0_i32_1 = arith.constant 0 : i32
    return %c0_i32, %c0_i32_0 : i32, i32
  }
  func.func @transform_3(%arg0: i32) -> (i32, i32) {
    %c0_i32 = arith.constant 0 : i32
    %c0_i32_0 = arith.constant 0 : i32
    %c0_i32_1 = arith.constant 0 : i32
    return %c0_i32, %c0_i32_0 : i32, i32
  }
  func.func @transform_4(%arg0: i32) -> (i32, i32) {
    %c0_i32 = arith.constant 0 : i32
    %c0_i32_0 = arith.constant 0 : i32
    return %arg0, %c0_i32 : i32, i32
  }
}

</mosaic_0001>

<bundles_post_ra>
// kernel: tpu_custom_call.1
= control target key start
LH: loop header
LB: loop body
LE: loop exit
PB: predicated region body
PF: predicated region fallthrough
CT: control target
= control target key end

     0   :  { %9 = vsyncpa [#allocation6], 0  ;;  %s4333_s0 = inlined_call_operand.hbm [shape: f32[144], index: 0, kind: input, shape index: {}]   ;;  %s4334_s1 = inlined_call_operand.hbm [shape: f32[50,128], index: 1, kind: input, shape index: {}]   ;;  %s4335_s2 = inlined_call_operand.hbm [shape: bf16[128,128], index: 2, kind: input, shape index: {}]   ;;  %s4336_s3 = inlined_call_operand.vmem [shape: f32[2,128], index: 3, kind: input, shape index: {}]   ;;  %s4337_s4 = inlined_call_operand.hbm [shape: bf16[768,128], index: 4, kind: output, shape index: {}]  }
   0x1   :  { %10 = vsyncpa [#allocation4], 0 }
   0x2   :  { %11 = vsyncpa [#allocation9], 0 }
   0x3   :  { %12 = vsyncpa [#allocation5], 0 }
   0x4   :  { %14 = vsyncpa [#allocation5 + $0x1], 0  ;;  %s2822_s15 = smov 0   ;;  %s2824_s16 = smov 0  }
   0x5   :  { %s2826_s17 = smov 0   ;;  %s2828_s18 = smov 0  }
   0x6 LB: > { %s2843_s19 = sadd.s32 4294967295, %s2784_s18   ;;  %s2261_s20 = sadd.s32 4294967294, %s2784_s18   ;;  %s2784_s18 = sphi %s2828_s18, %s4373_s18   ;;  %s2780_s17 = sphi %s2826_s17, %s4372_s17   ;;  %s2776_s16 = sphi %s2824_s16, %s4371_s16   ;;  %s2772_s15 = sphi %s2822_s15, %s4370_s15  }
   0x7   : > { %s2847_s21 = sadd.s32 1, %s2784_s18   ;;  %s111_s22 = sadd.s32 1, %s2780_s17 }
   0x8   : > { %s108_s23 = ssub.s32 %s2784_s18, %s2847_s21  ;;  %p121_p0 = scmp.ne.s32.totalorder %s2780_s17, %s2776_s16 }
   0x9   : > { %p109_p1 = scmp.eq.s32.totalorder %s108_s23, 0  ;;  %p122_p2 = scmp.eq.s32.totalorder %s2843_s19, 3 }
   0xa   : > { %p127_p3 = scmp.ne.s32.totalorder %s2776_s16, %s2772_s15  ;;  %p128_p4 = scmp.eq.s32.totalorder %s2261_s20, 3 }
   0xb   : > { %s2858_s24 = scalar_select %p109_p1, %s2780_s17, %s111_s22  }
   0xc   : > { %p2860_p5 = por %p122_p2, %p121_p0  ;;  %p2864_p6 = por %p128_p4, %p127_p3 }
   0xd   : > { %p2262_p7 = scmp.ge.s32.totalorder %s2784_s18, 1  ;;  %p135_p8 = scmp.lt.s32.totalorder %s2784_s18, 5 }
   0xe   : > { %p2570_p9 = scmp.eq.s32.totalorder %s2843_s19, 0  ;;  %s147_s30 = sshll.u32 %s4333_s0, 4  ;;  %s148_s30 = int_to_ptr.hbm [resolvable:$true] %s147_s30 }
   0xf   : > { %p2871_p10 = pnand %p2262_p7, %p135_p8  ;;  %s156_s7 = sshll.u32 %s4334_s1, 4  ;;  %s157_s7 = int_to_ptr.hbm [resolvable:$true] %s156_s7 }
  0x10   : > { %s2786_s9 = smov [#allocation7]   ;;  %s2787_s11 = smov [#allocation3]  }
  0x11   : > { %p2556_p11 = pneg %p2871_p10  ;;  %s158_s10 = sshll.u32 %s2786_s9, 4  ;;  %s159_s10 = int_to_ptr.vmem [resolvable:$true] %s158_s10 }
  0x12   : > { %s2788_s12 = smov 128   ;;  %s2789_s13 = smov 8  }
  0x13   : > { %p2885_p12 = pnand %p2570_p9, %p2556_p11  ;;  %s170_s22 = sshll.u32 %s4335_s2, 4  ;;  %s171_s22 = int_to_ptr.hbm [resolvable:$true] %s170_s22 }
  0x14   : > { %s2790_s23 = smov [#allocation8]   ;;  %s2791_s29 = smov 64  }
  0x15   : > { %2559 = dma.hbm_to_smem (!%p2885_p12), %s148_s30, 32, %s2787_s11, [#allocation6]  }
  0x16   : > { %2562 = dma.hbm_to_vmem [thread:$0]  (!%p2885_p12), %s157_s7, 896, %s159_s10, [#allocation4], %s2788_s12, %s2788_s12, %s2789_s13  }
  0x17   : > { %s172_s28 = sshll.u32 %s2790_s23, 4  ;;  %s2792_s5 = smov 4   ;;  %s173_s28 = int_to_ptr.vmem [resolvable:$true] %s172_s28 }
  0x18   : > { %2565 = dma.hbm_to_vmem [thread:$0]  (!%p2885_p12), %s171_s22, 1024, %s173_s28, [#allocation9], %s2791_s29, %s2791_s29, %s2792_s5  }
  0x19   : > { %191 = sbr.rel (%p2871_p10) target bundleno = 667 (0x29b), region = 36 }
  0x1e   : > { %2755 = dma.done.wait (%p2570_p9), [#allocation6], 32  }
  0x1f   : > { %2757 = vsyncadd (%p2570_p9), [#allocation6], 4294967264 }
  0x20   : > { %2759 = dma.done.wait (%p2570_p9), [#allocation4], 896  }
  0x21   : > { %2761 = vsyncadd (%p2570_p9), [#allocation4], 4294966400 }
  0x22   : > { %2763 = dma.done.wait (%p2570_p9), [#allocation9], 1024  }
  0x23   : > { %2765 = vsyncadd (%p2570_p9), [#allocation9], 4294966272 }
  0x24   : > { %208 = sfence }
  0x25   : > { %s2913_s27 = smul.u32 36, %s2843_s19  ;;  %v2918_v0 = vld [vmem:[#allocation7 + $0x10] sm:$0xff]  ;;  %v2920_v1 = vld [vmem:[#allocation7 + $0x18] sm:$0xff]  ;;  %v2922_v2 = vld [vmem:[#allocation7] sm:$0xff]  ;;  %vm260_vm0 = vcmask 1046528   ;;  %vm303_vm1 = vcmask 1045504  }
  0x26   : > { %v2927_v4 = vld [vmem:[#allocation7 + $0x8] sm:$0xff]  ;;  %v2957_v17 = vld [vmem:[#allocation7 + $0x20] sm:$0xff]  ;;  %s2971_s23 = sshll.u32 %s2843_s19, 2  ;;  %s2793_s29 = smov 127   ;;  %v3020_v63 = vld [vmem:[#allocation7 + $0x30] sm:$0x3] }
  0x27   : > { %s329_s30 = sadd.s32 1, %s2913_s27  ;;  %s338_s6 = sadd.s32 4, %s2913_s27  ;;  %v2978_v38 = vld [vmem:[#allocation7 + $0x28] sm:$0xff] }
  0x28   : > { %s330_s7 = sld [smem:[#allocation3 + %s329_s30]]  ;;  %s380_s8 = sadd.s32 7, %s2913_s27 }
  0x29   : > { %s339_s9 = sld [smem:[#allocation3 + %s338_s6]]  ;;  %s440_s11 = sadd.s32 2, %s2913_s27 }
  0x2a   : > { %s381_s10 = sld [smem:[#allocation3 + %s380_s8]]  ;;  %s449_s12 = sadd.s32 5, %s2913_s27 }
  0x2b   : > { %s491_s13 = sadd.s32 8, %s2913_s27  ;;  %s2947_s14 = sld [smem:[#allocation3 + %s440_s11]] }
  0x2c   : > { %s2959_s20 = sld [smem:[#allocation3 + %s449_s12]]  ;;  %s632_s28 = sadd.s32 1, %s2971_s23 }
  0x2d   : > { %s2963_s22 = sld [smem:[#allocation3 + %s491_s13]]  ;;  %s3004_s5 = smul.u32 9, %s632_s28 }
  0x2e   : > { %v2925_v3 = vstv %s330_s7  ;;  %s2794_s11 = smov 126   ;;  %s1424_s28 = sadd.s32 3, %s2971_s23 }
  0x2f   : > { %v334_v5 = vmul.f32 %v2925_v3, %v2918_v0  ;;  %v2932_v6 = vstv %s339_s9  ;;  %v332_v7 = vmul.f32 %v2925_v3, %v2922_v2  ;;  %v335_v8 = vmul.f32 %v2925_v3, %v2920_v1  ;;  %s735_s30 = sadd.s32 4, %s3004_s5  ;;  %s726_s6 = sadd.s32 1, %s3004_s5 }
  0x30   : > { %v343_v9 = vmul.f32 %v2932_v6, %v2918_v0  ;;  %v344_v10 = vmul.f32 %v2932_v6, %v2920_v1  ;;  %v2943_v11 = vstv %s381_s10  ;;  %v341_v12 = vmul.f32 %v2932_v6, %v2922_v2  ;;  %s3043_s7 = sld [smem:[#allocation3 + %s735_s30]]  ;;  %s777_s9 = sadd.s32 7, %s3004_s5 }
  0x31   : > { %v385_v13 = vmul.f32 %v2943_v11, %v2918_v0  ;;  %v386_v14 = vmul.f32 %v2943_v11, %v2920_v1  ;;  %v342_v15 = vmul.f32 %v2932_v6, %v2927_v4  ;;  %v383_v16 = vmul.f32 %v2943_v11, %v2922_v2  ;;  %s3052_s8 = sld [smem:[#allocation3 + %s726_s6]]  ;;  %s846_s12 = sadd.s32 5, %s3004_s5 }
  0x32   : > { %v358_v18 = vrot.slane %v343_v9, 1  ;;  %v360_v19 = vrot.slane %v344_v10, 1  ;;  %v355_v20 = vrot.slane %v341_v12, 1  ;;  %v384_v21 = vmul.f32 %v2943_v11, %v2927_v4  ;;  %s3070_s10 = sld [smem:[#allocation3 + %s777_s9]]  ;;  %s888_s13 = sadd.s32 8, %s3004_s5 }
  0x33   : > { %v400_v22 = vrot.slane %v385_v13, 2  ;;  %v402_v23 = vrot.slane %v386_v14, 2  ;;  %v356_v24 = vrot.slane %v342_v15, 1  ;;  %v397_v25 = vrot.slane %v383_v16, 2  ;;  %s3153_s6 = smul.u32 9, %s1424_s28 }
  0x34   : > { %v361_v26 = vsel %vm260_vm0, %v358_v18, %v360_v19  ;;  %v398_v27 = vrot.slane %v384_v21, 2  ;;  %v345_v28 = vmul.f32 %v2932_v6, %v2957_v17  ;;  %v387_v29 = vmul.f32 %v2943_v11, %v2957_v17 }
  0x35   : > { %v376_v30 = vadd.f32 %v361_v26, %v334_v5  ;;  %v403_v31 = vsel %vm303_vm1, %v400_v22, %v402_v23  ;;  %v357_v32 = vsel %vm260_vm0, %v355_v20, %v356_v24  ;;  %v333_v33 = vmul.f32 %v2925_v3, %v2927_v4  ;;  %s1518_s9 = sadd.s32 1, %s3153_s6 }
  0x36   : > { %v374_v34 = vadd.f32 %v357_v32, %v332_v7  ;;  %v399_v35 = vsel %vm303_vm1, %v397_v25, %v398_v27  ;;  %v362_v36 = vrot.slane %v345_v28, 1  ;;  %v404_v37 = vrot.slane %v387_v29, 2 }
  0x37   : > { %v418_v39 = vadd.f32 %v403_v31, %v376_v30  ;;  %v359_v40 = vsel %vm260_vm0, %v356_v24, %v358_v18  ;;  %v401_v41 = vsel %vm303_vm1, %v398_v27, %v400_v22  ;;  %v336_v42 = vmul.f32 %v2925_v3, %v2957_v17 }
  0x38   : > { %v416_v43 = vadd.f32 %v399_v35, %v374_v34  ;;  %v363_v44 = vsel %vm260_vm0, %v360_v19, %v362_v36  ;;  %v405_v45 = vsel %vm303_vm1, %v402_v23, %v404_v37  ;;  %v375_v46 = vadd.f32 %v359_v40, %v333_v33 }
  0x39   : > { %426 = vrot.lane.b32.xlu1 %v418_v39, %s2793_s29  ;;  %v377_v47 = vadd.f32 %v363_v44, %v335_v8  ;;  %v346_v48 = vmul.f32 %v2932_v6, %v2978_v38  ;;  %v388_v49 = vmul.f32 %v2943_v11, %v2978_v38  ;;  %v2993_v50 = vstv %s2947_s14  ;;  %s3106_s14 = sld [smem:[#allocation3 + %s846_s12]] }
  0x3a   : > { %422 = vrot.lane.b32.xlu0 %v416_v43, %s2793_s29  ;;  %v417_v51 = vadd.f32 %v401_v41, %v375_v46  ;;  %v444_v52 = vmul.f32 %v2993_v50, %v2927_v4  ;;  %v2999_v53 = vstv %s2959_s20  ;;  %v3002_v54 = vstv %s2963_s22  ;;  %s837_s20 = sadd.s32 2, %s3004_s5  ;;  %s3118_s22 = sld [smem:[#allocation3 + %s888_s13]] }
  0x3b   : > { %v419_v55 = vadd.f32 %v405_v45, %v377_v47  ;;  %v364_v56 = vrot.slane %v346_v48, 1  ;;  %v406_v57 = vrot.slane %v388_v49, 2  ;;  %v453_v58 = vmul.f32 %v2999_v53, %v2927_v4  ;;  %s3139_s30 = sld [smem:[#allocation3 + %s837_s20]] }
  0x3c   : > { %v3010_v59 = vmul.f32 %v2999_v53, %v2918_v0  ;;  %v495_v60 = vmul.f32 %v3002_v54, %v2927_v4  ;;  %v3016_v61 = vmul.f32 %v3002_v54, %v2918_v0  ;;  %v443_v62 = vmul.f32 %v2993_v50, %v2922_v2 }
  0x3d   : > { %v365_v5 = vsel %vm260_vm0, %v362_v36, %v364_v56  ;;  %v407_v7 = vsel %vm303_vm1, %v404_v37, %v406_v57  ;;  %v467_v8 = vrot.slane %v453_v58, 1  ;;  %v452_v9 = vmul.f32 %v2999_v53, %v2922_v2 }
  0x3e   : > { %v378_v10 = vadd.f32 %v365_v5, %v336_v42  ;;  %v469_v12 = vrot.slane %v3010_v59, 1  ;;  %v509_v13 = vrot.slane %v495_v60, 2  ;;  %v511_v14 = vrot.slane %v3016_v61, 2 }
  0x3f   : > { %v466_v15 = vrot.slane %v452_v9, 1  ;;  %v494_v16 = vmul.f32 %v3002_v54, %v2922_v2  ;;  %v347_v18 = vmul.f32 %v2932_v6, %v3020_v63  ;;  %v337_v21 = vmul.f32 %v2925_v3, %v2978_v38 }
  0x40   : > { %v420_v19 = vadd.f32 %v407_v7, %v378_v10  ;;  %v470_v20 = vsel %vm260_vm0, %v467_v8, %v469_v12  ;;  %v389_v22 = vmul.f32 %v2943_v11, %v3020_v63  ;;  %v512_v3 = vsel %vm303_vm1, %v509_v13, %v511_v14 }
  0x41   : > { %428 = vrot.lane.b32.xlu1 %v419_v55, %s2793_s29  ;;  %v486_v23 = vadd.f32 %v470_v20, %v444_v52  ;;  %v468_v24 = vsel %vm260_vm0, %v466_v15, %v467_v8  ;;  %v508_v25 = vrot.slane %v494_v16, 2  ;;  %v366_v6 = vrot.slane %v347_v18, 1 }
  0x42   : > { %424 = vrot.lane.b32.xlu0 %v417_v51, %s2793_s29  ;;  %430 = vrot.lane.b32.xlu2 %v420_v19, %s2793_s29  ;;  %v485_v26 = vadd.f32 %v468_v24, %v443_v62  ;;  %v408_v11 = vrot.slane %v389_v22, 2  ;;  %v456_v27 = vmul.f32 %v2999_v53, %v2957_v17  ;;  %v457_v30 = vmul.f32 %v2999_v53, %v2978_v38 }
  0x43   : > { %v510_v28 = vsel %vm303_vm1, %v508_v25, %v509_v13  ;;  %v367_v29 = vsel %vm260_vm0, %v364_v56, %v366_v6  ;;  %v447_v33 = vmul.f32 %v2993_v50, %v2957_v17  ;;  %v528_v35 = vadd.f32 %v512_v3, %v486_v23 }
  0x44   : > { %v379_v31 = vadd.f32 %v367_v29, %v337_v21  ;;  %v409_v32 = vsel %vm303_vm1, %v406_v57, %v408_v11  ;;  %v473_v34 = vrot.slane %v456_v27, 1  ;;  %v475_v36 = vrot.slane %v457_v30, 1 }
  0x45   : > { %v498_v37 = vmul.f32 %v3002_v54, %v2957_v17  ;;  %v499_v39 = vmul.f32 %v3002_v54, %v2978_v38  ;;  %v527_v40 = vadd.f32 %v510_v28, %v485_v26  ;;  %v455_v42 = vmul.f32 %v2999_v53, %v2920_v1 }
  0x46   : > { %v421_v41 = vadd.f32 %v409_v32, %v379_v31  ;;  %v497_v43 = vmul.f32 %v3002_v54, %v2920_v1  ;;  %v476_v44 = vsel %vm260_vm0, %v473_v34, %v475_v36  ;;  %v446_v47 = vmul.f32 %v2993_v50, %v2920_v1 }
  0x47   : > { %v515_v45 = vrot.slane %v498_v37, 2  ;;  %v517_v46 = vrot.slane %v499_v39, 2  ;;  %v471_v48 = vrot.slane %v455_v42, 1  ;;  %v445_v51 = vmul.f32 %v2993_v50, %v2918_v0 }
  0x48   : > { %v513_v49 = vrot.slane %v497_v43, 2  ;;  %v458_v52 = vmul.f32 %v2999_v53, %v3020_v63  ;;  %v489_v55 = vadd.f32 %v476_v44, %v447_v33  ;;  %v448_v56 = vmul.f32 %v2993_v50, %v2978_v38 }
  0x49   : > { %535 = vrot.lane.b32.xlu1 %v528_v35, %s2794_s11  ;;  %v500_v57 = vmul.f32 %v3002_v54, %v3020_v63  ;;  %v3085_v58 = vstv %s3043_s7  ;;  %v518_v53 = vsel %vm303_vm1, %v515_v45, %v517_v46  ;;  %v474_v60 = vsel %vm260_vm0, %v471_v48, %v473_v34  ;;  %s1028_s7 = sadd.s32 2, %s2971_s23 }
  0x4a   : > { %533 = vrot.lane.b32.xlu0 %v527_v40, %s2794_s11  ;;  %432 = vrot.lane.b32.xlu2 %v421_v41, %s2793_s29  ;;  %v477_v62 = vrot.slane %v458_v52, 1  ;;  %v3093_v5 = vstv %s3052_s8  ;;  %v488_v7 = vadd.f32 %v474_v60, %v446_v47  ;;  %v516_v50 = vsel %vm303_vm1, %v513_v49, %v515_v45  ;;  %s3171_s23 = smul.u32 9, %s1028_s7  ;;  %s1527_s8 = sadd.s32 4, %s3153_s6 }
  0x4b   : > { %v472_v54 = vsel %vm260_vm0, %v469_v12, %v471_v48  ;;  %v514_v8 = vsel %vm303_vm1, %v511_v14, %v513_v49  ;;  %v519_v13 = vrot.slane %v500_v57, 2  ;;  %v739_v15 = vmul.f32 %v3085_v58, %v2927_v4  ;;  %s3201_s12 = sld [smem:[#allocation3 + %s1527_s8]] }
  0x4c   : > { %v487_v9 = vadd.f32 %v472_v54, %v445_v51  ;;  %v478_v10 = vsel %vm260_vm0, %v475_v36, %v477_v62  ;;  %v531_v16 = vadd.f32 %v518_v53, %v489_v55  ;;  %v730_v59 = vmul.f32 %v3093_v5, %v2927_v4  ;;  %s1131_s13 = sadd.s32 4, %s3171_s23  ;;  %s1173_s20 = sadd.s32 7, %s3171_s23 }
  0x4d   : > { %v3112_v61 = vmul.f32 %v3085_v58, %v2918_v0  ;;  %v530_v12 = vadd.f32 %v516_v50, %v488_v7  ;;  %v753_v18 = vrot.slane %v739_v15, 1  ;;  %v3116_v19 = vstv %s3070_s10  ;;  %s1122_s10 = sadd.s32 1, %s3171_s23  ;;  %s3233_s7 = sld [smem:[#allocation3 + %s1173_s20]] }
  0x4e   : > { %v529_v14 = vadd.f32 %v514_v8, %v487_v9  ;;  %v490_v20 = vadd.f32 %v478_v10, %v448_v56  ;;  %v781_v22 = vmul.f32 %v3116_v19, %v2927_v4  ;;  %v3125_v23 = vmul.f32 %v3116_v19, %v2918_v0  ;;  %s3220_s28 = sld [smem:[#allocation3 + %s1122_s10]]  ;;  %s684_s20 = sadd.s32 6, %s3004_s5 }
  0x4f   : > { %v755_v21 = vrot.slane %v3112_v61, 1  ;;  %v520_v24 = vsel %vm303_vm1, %v517_v46, %v519_v13  ;;  %v741_v25 = vmul.f32 %v3085_v58, %v2920_v1  ;;  %v3133_v6 = vmul.f32 %v3085_v58, %v2957_v17 }
  0x50   : > { %v3137_v3 = vmul.f32 %v3116_v19, %v2920_v1  ;;  %v795_v11 = vrot.slane %v781_v22, 2  ;;  %v797_v27 = vrot.slane %v3125_v23, 2  ;;  %v3148_v28 = vmul.f32 %v3116_v19, %v2957_v17 }
  0x51   : > { %541 = vrot.lane.b32.xlu1 %v531_v16, %s2794_s11  ;;  %v756_v26 = vsel %vm260_vm0, %v753_v18, %v755_v21  ;;  %v757_v30 = vrot.slane %v741_v25, 1  ;;  %v759_v31 = vrot.slane %v3133_v6, 1  ;;  %v738_v33 = vmul.f32 %v3085_v58, %v2922_v2 }
  0x52   : > { %539 = vrot.lane.b32.xlu0 %v530_v12, %s2794_s11  ;;  %537 = vrot.lane.b32.xlu2 %v529_v14, %s2794_s11  ;;  %v772_v29 = vadd.f32 %v756_v26, %v730_v59  ;;  %v798_v32 = vsel %vm303_vm1, %v795_v11, %v797_v27  ;;  %v780_v34 = vmul.f32 %v3116_v19, %v2922_v2  ;;  %v3166_v39 = vstv %s3106_s14  ;;  %s3210_s14 = sld [smem:[#allocation3 + %s1518_s9]]  ;;  %s243_s9 = sadd.s32 3, %s2913_s27 }
  0x53   : > { %v532_v35 = vadd.f32 %v520_v24, %v490_v20  ;;  %v732_v36 = vmul.f32 %v3093_v5, %v2920_v1  ;;  %v729_v37 = vmul.f32 %v3093_v5, %v2922_v2  ;;  %v760_v40 = vsel %vm260_vm0, %v757_v30, %v759_v31  ;;  %s244_s10 = sld [smem:[#allocation3 + %s243_s9]]  ;;  %s1233_s9 = sadd.s32 2, %s3171_s23 }
  0x54   : > { %v799_v41 = vrot.slane %v3137_v3, 2  ;;  %v801_v42 = vrot.slane %v3148_v28, 2  ;;  %v752_v43 = vrot.slane %v738_v33, 1  ;;  %v814_v44 = vadd.f32 %v798_v32, %v772_v29 }
  0x55   : > { %v849_v45 = vmul.f32 %v3166_v39, %v2922_v2  ;;  %v3177_v46 = vmul.f32 %v3166_v39, %v2927_v4  ;;  %v3180_v47 = vstv %s3118_s22  ;;  %v794_v49 = vrot.slane %v780_v34, 2  ;;  %s1569_s22 = sadd.s32 7, %s3153_s6 }
  0x56   : > { %v754_v48 = vsel %vm260_vm0, %v752_v43, %v753_v18  ;;  %v774_v51 = vadd.f32 %v760_v40, %v732_v36  ;;  %v3186_v52 = vstv %s3139_s30  ;;  %v891_v55 = vmul.f32 %v3180_v47, %v2922_v2  ;;  %s3224_s30 = sld [smem:[#allocation3 + %s1131_s13]] }
  0x57   : > { %v3192_v56 = vmul.f32 %v3180_v47, %v2927_v4  ;;  %v802_v57 = vsel %vm303_vm1, %v799_v41, %v801_v42  ;;  %v863_v53 = vrot.slane %v849_v45, 1  ;;  %v864_v60 = vrot.slane %v3177_v46, 1  ;;  %s3236_s8 = sld [smem:[#allocation3 + %s1569_s22]] }
  0x58   : > { %v743_v62 = vmul.f32 %v3085_v58, %v2978_v38  ;;  %v771_v7 = vadd.f32 %v754_v48, %v729_v37  ;;  %v785_v50 = vmul.f32 %v3116_v19, %v2978_v38  ;;  %v731_v54 = vmul.f32 %v3093_v5, %v2918_v0  ;;  %s3399_s22 = sld [smem:[#allocation3 + %s3004_s5]] }
  0x59   : > { %v796_v8 = vsel %vm303_vm1, %v794_v49, %v795_v11  ;;  %v840_v9 = vmul.f32 %v3186_v52, %v2922_v2  ;;  %v758_v13 = vsel %vm260_vm0, %v755_v21, %v757_v30  ;;  %v905_v15 = vrot.slane %v891_v55, 2 }
  0x5a   : > { %543 = vrot.lane.b32.xlu2 %v532_v35, %s2794_s11  ;;  %821 = vrot.lane.b32.xlu0 %v814_v44, %s2793_s29  ;;  %v761_v10 = vrot.slane %v743_v62, 1  ;;  %v906_v16 = vrot.slane %v3192_v56, 2  ;;  %v773_v59 = vadd.f32 %v758_v13, %v731_v54  ;;  %v800_v12 = vsel %vm303_vm1, %v797_v27, %v799_v41 }
  0x5b   : > { %v816_v14 = vadd.f32 %v802_v57, %v774_v51  ;;  %v865_v18 = vsel %vm260_vm0, %v863_v53, %v864_v60  ;;  %v733_v20 = vmul.f32 %v3093_v5, %v2957_v17  ;;  %v3231_v61 = vmul.f32 %v3166_v39, %v2918_v0 }
  0x5c   : > { %v813_v21 = vadd.f32 %v796_v8, %v771_v7  ;;  %v762_v22 = vsel %vm260_vm0, %v759_v31, %v761_v10  ;;  %v803_v23 = vrot.slane %v785_v50, 2  ;;  %v815_v24 = vadd.f32 %v800_v12, %v773_v59 }
  0x5d   : > { %v4339_v25 = vrot.slane %v3231_v61, 1  ;;  %v3241_v6 = vmul.f32 %v3180_v47, %v2918_v0  ;;  %v744_v3 = vmul.f32 %v3085_v58, %v3020_v63  ;;  %v786_v26 = vmul.f32 %v3116_v19, %v3020_v63 }
  0x5e   : > { %v882_v11 = vadd.f32 %v865_v18, %v840_v9  ;;  %v907_v27 = vsel %vm303_vm1, %v905_v15, %v906_v16  ;;  %823 = vrot.lane.b32.xlu1 %v815_v24, %s2793_s29  ;;  %v734_v29 = vmul.f32 %v3093_v5, %v2978_v38  ;;  %v775_v30 = vadd.f32 %v762_v22, %v733_v20 }
  0x5f   : > { %v763_v31 = vrot.slane %v744_v3, 1  ;;  %v805_v32 = vrot.slane %v786_v26, 2  ;;  %v3252_v33 = vstv %s3201_s12  ;;  %v804_v58 = vsel %vm303_vm1, %v801_v42, %v803_v23  ;;  %s286_s12 = sadd.s32 6, %s2913_s27 }
  0x60   : > { %v841_v19 = vmul.f32 %v3186_v52, %v2927_v4  ;;  %v867_v5 = vsel %vm260_vm0, %v864_v60, %v4339_v25  ;;  %v4338_v34 = vrot.slane %v3241_v6, 2  ;;  %v924_v37 = vadd.f32 %v907_v27, %v882_v11  ;;  %s287_s13 = sld [smem:[#allocation3 + %s286_s12]] }
  0x61   : > { %v764_v35 = vsel %vm260_vm0, %v761_v10, %v763_v31  ;;  %v806_v36 = vsel %vm303_vm1, %v803_v23, %v805_v32  ;;  %v3268_v41 = vstv %s3210_s14  ;;  %v1530_v28 = vmul.f32 %v3252_v33, %v2922_v2  ;;  %s235_s14 = sld [smem:[#allocation3 + %s2913_s27]]  ;;  %s642_s27 = sadd.s32 3, %s3004_s5 }
  0x62   : > { %825 = vrot.lane.b32.xlu0 %v816_v14, %s2793_s29  ;;  %819 = vrot.lane.b32.xlu2 %v813_v21, %s2793_s29  ;;  %v776_v40 = vadd.f32 %v764_v35, %v734_v29  ;;  %v817_v42 = vadd.f32 %v804_v58, %v775_v30  ;;  %v3273_v43 = vstv %s3220_s28  ;;  %v3276_v44 = vstv %s3224_s30  ;;  %s643_s28 = sld [smem:[#allocation3 + %s642_s27]]  ;;  %s1242_s5 = sadd.s32 5, %s3171_s23 }
  0x63   : > { %v3279_v45 = vstv %s3233_s7  ;;  %v883_v46 = vadd.f32 %v867_v5, %v841_v19  ;;  %v1531_v49 = vmul.f32 %v3252_v33, %v2927_v4  ;;  %v3284_v51 = vstv %s3236_s8  ;;  %s685_s30 = sld [smem:[#allocation3 + %s684_s20]]  ;;  %s1284_s8 = sadd.s32 8, %s3171_s23 }
  0x64   : > { %v818_v48 = vadd.f32 %v806_v36, %v776_v40  ;;  %v909_v55 = vsel %vm303_vm1, %v906_v16, %v4338_v34  ;;  %v1134_v56 = vmul.f32 %v3276_v44, %v2922_v2  ;;  %v1135_v57 = vmul.f32 %v3276_v44, %v2927_v4  ;;  %s3515_s7 = sld [smem:[#allocation3 + %s1242_s5]]  ;;  %s1680_s27 = sadd.s32 8, %s3153_s6 }
  0x65   : > { %v1176_v53 = vmul.f32 %v3279_v45, %v2922_v2  ;;  %v1544_v60 = vrot.slane %v1530_v28, 1  ;;  %v1125_v62 = vmul.f32 %v3273_v43, %v2922_v2  ;;  %v1177_v7 = vmul.f32 %v3279_v45, %v2927_v4  ;;  %s3530_s12 = sld [smem:[#allocation3 + %s1284_s8]] }
  0x66   : > { %829 = vrot.lane.b32.xlu1 %v818_v48, %s2793_s29  ;;  %v3302_v50 = vmul.f32 %v3252_v33, %v2918_v0  ;;  %v1572_v54 = vmul.f32 %v3284_v51, %v2922_v2  ;;  %v1148_v8 = vrot.slane %v1134_v56, 1  ;;  %v1149_v9 = vrot.slane %v1135_v57, 1  ;;  %v2372_v56 = vld [vmem:[#allocation8 + $0x30] sm:$0xff]  ;;  %v2371_v57 = vld [vmem:[#allocation8 + $0x28] sm:$0xff]  ;;  %s3553_s20 = sld [smem:[#allocation3 + %s1680_s27]] }
  0x67   : > { %v1190_v10 = vrot.slane %v1176_v53, 2  ;;  %v1545_v13 = vrot.slane %v1531_v49, 1  ;;  %v1191_v15 = vrot.slane %v1177_v7, 2  ;;  %v3311_v59 = vmul.f32 %v3284_v51, %v2918_v0  ;;  %v2370_v53 = vld [vmem:[#allocation8 + $0x20] sm:$0xff]  ;;  %s1030_s8 = sld [smem:[#allocation3 + %s3171_s23]] }
  0x68   : > { %v4344_v16 = vrot.slane %v3302_v50, 1  ;;  %v1573_v12 = vmul.f32 %v3284_v51, %v2927_v4  ;;  %v1150_v14 = vsel %vm260_vm0, %v1148_v8, %v1149_v9  ;;  %v3318_v18 = vmul.f32 %v3276_v44, %v2918_v0 }
  0x69   : > { %v3322_v20 = vmul.f32 %v3279_v45, %v2918_v0  ;;  %v1167_v21 = vadd.f32 %v1150_v14, %v1125_v62  ;;  %v1192_v22 = vsel %vm303_vm1, %v1190_v10, %v1191_v15  ;;  %v1522_v23 = vmul.f32 %v3268_v41, %v2927_v4  ;;  %v2369_v62 = vld [vmem:[#allocation8 + $0x18] sm:$0xff] }
  0x6a   : > { %930 = vrot.lane.b32.xlu0 %v924_v37, %s2794_s11  ;;  %827 = vrot.lane.b32.xlu2 %v817_v42, %s2793_s29  ;;  %v1126_v24 = vmul.f32 %v3273_v43, %v2927_v4  ;;  %v1548_v3 = vsel %vm260_vm0, %v1545_v13, %v4344_v16  ;;  %v4340_v26 = vrot.slane %v3311_v59, 2  ;;  %v1151_v11 = vrot.slane %v3318_v18, 1 }
  0x6b   : > { %v1193_v27 = vrot.slane %v3322_v20, 2  ;;  %v925_v29 = vadd.f32 %v909_v55, %v883_v46  ;;  %v1521_v30 = vmul.f32 %v3268_v41, %v2922_v2  ;;  %v1586_v31 = vrot.slane %v1572_v54, 2  ;;  %v2373_v55 = vld [vmem:[#allocation8 + $0x38] sm:$0xff] }
  0x6c   : > { %v1209_v32 = vadd.f32 %v1192_v22, %v1167_v21  ;;  %v1546_v58 = vsel %vm260_vm0, %v1544_v60, %v1545_v13  ;;  %v1587_v19 = vrot.slane %v1573_v12, 2  ;;  %v1152_v5 = vsel %vm260_vm0, %v1149_v9, %v1151_v11  ;;  %1980 = vmatpush.bf16.msra.mxu0 %v2373_v55  ;;  %2517 = vmatpush.bf16.msra.mxu1 %v2373_v55  ;;  %v2368_v21 = vld [vmem:[#allocation8 + $0x10] sm:$0xff] }
  0x6d   : > { %v1194_v35 = vsel %vm303_vm1, %v1191_v15, %v1193_v27  ;;  %v1564_v36 = vadd.f32 %v1548_v3, %v1522_v23  ;;  %v1168_v37 = vadd.f32 %v1152_v5, %v1126_v24  ;;  %v1563_v28 = vadd.f32 %v1546_v58, %v1521_v30  ;;  %2518 = vmatpush.bf16.msra.mxu2 %v2373_v55  ;;  %v2366_v58 = vld [vmem:[#allocation8] sm:$0xff] }
  0x6e   : > { %1215 = vrot.lane.b32.xlu1 %v1209_v32, %s2793_s29  ;;  %v1590_v40 = vsel %vm303_vm1, %v1587_v19, %v4340_v26  ;;  %v1588_v46 = vsel %vm303_vm1, %v1586_v31, %v1587_v19  ;;  %2519 = vmatpush.bf16.msra.mxu3 %v2373_v55  ;;  %v245_v60 = vstv %s244_s10  ;;  %v288_v8 = vstv %s287_s13  ;;  %s1638_s10 = sadd.s32 5, %s3153_s6  ;;  %s3532_s13 = sld [smem:[#allocation3 + %s1233_s9]] }
  0x6f   : > { %v1210_v42 = vadd.f32 %v1194_v35, %v1168_v37  ;;  %v1606_v48 = vadd.f32 %v1590_v40, %v1564_v36  ;;  %v1605_v49 = vadd.f32 %v1588_v46, %v1563_v28  ;;  %v3357_v7 = vmul.f32 %v245_v60, %v2920_v1 }
  0x70   : > { %1981 = vmatpush.bf16.msra.mxu0 %v2372_v56  ;;  %2520 = vmatpush.bf16.msra.mxu1 %v2372_v56  ;;  %v248_v54 = vmul.f32 %v245_v60, %v2918_v0  ;;  %v3360_v9 = vstv %s235_s14  ;;  %v3366_v15 = vmul.f32 %v288_v8, %v2920_v1  ;;  %v3369_v14 = vmul.f32 %v288_v8, %v2918_v0  ;;  %s3537_s14 = sld [smem:[#allocation3 + %s1638_s10]]  ;;  %s1476_s10 = sadd.s32 6, %s3153_s6 }
  0x71   : > { %2521 = vmatpush.bf16.msra.mxu2 %v2372_v56  ;;  %v266_v13 = vrot.slane %v3357_v7, 1  ;;  %v239_v22 = vmul.f32 %v3360_v9, %v2918_v0  ;;  %v252_v19 = vmul.f32 %v245_v60, %v3020_v63  ;;  %v247_v5 = vmul.f32 %v245_v60, %v2927_v4 }
  0x72   : > { %932 = vrot.lane.b32.xlu2 %v925_v29, %s2794_s11  ;;  %1217 = vrot.lane.b32.xlu0 %v1210_v42, %s2793_s29  ;;  %v264_v12 = vrot.slane %v248_v54, 1  ;;  %v309_v23 = vrot.slane %v3366_v15, 2  ;;  %v307_v3 = vrot.slane %v3369_v14, 2  ;;  %v2367_v29 = vld [vmem:[#allocation8 + $0x8] sm:$0xff]  ;;  %v246_v36 = vmul.f32 %v245_v60, %v2922_v2 }
  0x73   : > { %2522 = vmatpush.bf16.msra.mxu3 %v2372_v56  ;;  %v251_v37 = vmul.f32 %v245_v60, %v2978_v38  ;;  %v250_v40 = vmul.f32 %v245_v60, %v2957_v17  ;;  %v272_v28 = vrot.slane %v252_v19, 1  ;;  %v295_v42 = vmul.f32 %v288_v8, %v3020_v63 }
  0x74   : > { %1982 = vmatpush.bf16.msra.mxu0 %v2371_v57  ;;  %2523 = vmatpush.bf16.msra.mxu1 %v2371_v57  ;;  %v267_v24 = vsel %vm260_vm0, %v264_v12, %v266_v13  ;;  %v310_v32 = vsel %vm303_vm1, %v307_v3, %v309_v23  ;;  %v238_v54 = vmul.f32 %v3360_v9, %v2927_v4 }
  0x75   : > { %2524 = vmatpush.bf16.msra.mxu2 %v2371_v57  ;;  %v282_v31 = vadd.f32 %v267_v24, %v239_v22  ;;  %v270_v60 = vrot.slane %v251_v37, 1  ;;  %v294_v14 = vmul.f32 %v288_v8, %v2978_v38  ;;  %v268_v24 = vrot.slane %v250_v40, 1 }
  0x76   : > { %1613 = vrot.lane.b32.xlu1 %v1606_v48, %s2793_s29  ;;  %v262_v48 = vrot.slane %v247_v5, 1  ;;  %v237_v5 = vmul.f32 %v3360_v9, %v2922_v2  ;;  %v241_v37 = vmul.f32 %v3360_v9, %v2957_v17 }
  0x77   : > { %2525 = vmatpush.bf16.msra.mxu3 %v2371_v57  ;;  %v325_v35 = vadd.f32 %v310_v32, %v282_v31  ;;  %v261_v57 = vrot.slane %v246_v36, 1  ;;  %v273_v32 = vsel %vm260_vm0, %v270_v60, %v272_v28  ;;  %v313_v36 = vrot.slane %v294_v14, 2 }
  0x78   : > { %1983 = vmatpush.bf16.msra.mxu0 %v2370_v53  ;;  %2526 = vmatpush.bf16.msra.mxu1 %v2370_v53  ;;  %v265_v22 = vsel %vm260_vm0, %v262_v48, %v264_v12  ;;  %v271_v28 = vsel %vm260_vm0, %v268_v24, %v270_v60  ;;  %v269_v60 = vsel %vm260_vm0, %v266_v13, %v268_v24 }
  0x79   : > { %2527 = vmatpush.bf16.msra.mxu2 %v2370_v53  ;;  %v284_v14 = vadd.f32 %v271_v28, %v241_v37 }
  0x7a   : > { %1611 = vrot.lane.b32.xlu2 %v1605_v49, %s2793_s29  ;;  %v290_v49 = vmul.f32 %v288_v8, %v2927_v4 }
  0x7b   : > { %2528 = vmatpush.bf16.msra.mxu3 %v2370_v53  ;;  %v289_v53 = vmul.f32 %v288_v8, %v2922_v2 }
  0x7c   : > { %1984 = vmatpush.bf16.msra.mxu0 %v2369_v62  ;;  %2529 = vmatpush.bf16.msra.mxu1 %v2369_v62  ;;  %v305_v19 = vrot.slane %v290_v49, 2 }
  0x7d   : > { %2530 = vmatpush.bf16.msra.mxu2 %v2369_v62  ;;  %v304_v12 = vrot.slane %v289_v53, 2 }
  0x7f   : > { %2531 = vmatpush.bf16.msra.mxu3 %v2369_v62 }
  0x80   : > { %1985 = vmatpush.bf16.msra.mxu0 %v2368_v21  ;;  %2532 = vmatpush.bf16.msra.mxu1 %v2368_v21 }
  0x81   : > { %2533 = vmatpush.bf16.msra.mxu2 %v2368_v21 }
  0x83   : > { %2534 = vmatpush.bf16.msra.mxu3 %v2368_v21  ;;  %v293_v21 = vmul.f32 %v288_v8, %v2957_v17  ;;  %v263_v8 = vsel %vm260_vm0, %v261_v57, %v262_v48  ;;  %v306_v48 = vsel %vm303_vm1, %v304_v12, %v305_v19 }
  0x84   : > { %1986 = vmatpush.bf16.msra.mxu0 %v2367_v29  ;;  %2535 = vmatpush.bf16.msra.mxu1 %v2367_v29 }
  0x85   : > { %2536 = vmatpush.bf16.msra.mxu2 %v2367_v29  ;;  %v311_v40 = vrot.slane %v293_v21, 2  ;;  %v3422_v21 = vstv %s643_s28 }
  0x87   : > { %2537 = vmatpush.bf16.msra.mxu3 %v2367_v29  ;;  %v242_v29 = vmul.f32 %v3360_v9, %v2978_v38 }
  0x88   : > { %1987 = vmatpush.bf16.msra.mxu0 %v2366_v58  ;;  %2538 = vmatpush.bf16.msra.mxu1 %v2366_v58 }
  0x89   : > { %2539 = vmatpush.bf16.msra.mxu2 %v2366_v58 }
  0x8b   : > { %2540 = vmatpush.bf16.msra.mxu3 %v2366_v58  ;;  %v315_v58 = vrot.slane %v295_v42, 2  ;;  %v285_v42 = vadd.f32 %v273_v32, %v242_v29  ;;  %v3425_v32 = vstv %s3399_s22  ;;  %s1629_s22 = sadd.s32 2, %s3153_s6 }
  0x8c   : > { %v640_v13 = vmul.f32 %v3425_v32, %v2957_v17  ;;  %v639_v12 = vmul.f32 %v3425_v32, %v2920_v1  ;;  %s1630_s28 = sld [smem:[#allocation3 + %s1629_s22]] }
  0x8d   : > { %v316_v49 = vsel %vm303_vm1, %v313_v36, %v315_v58  ;;  %v3427_v58 = vstv %s685_s30  ;;  %s1080_s30 = sadd.s32 6, %s3171_s23 }
  0x8e   : > { %v328_v34 = vadd.f32 %v316_v49, %v285_v42  ;;  %v691_v7 = vmul.f32 %v3427_v58, %v2957_v17  ;;  %v3453_v28 = vmul.f32 %v3427_v58, %v2920_v1  ;;  %s1081_s5 = sld [smem:[#allocation3 + %s1080_s30]] }
  0x90   : > { %v708_v37 = vrot.slane %v691_v7, 2  ;;  %v706_v15 = vrot.slane %v3453_v28, 2 }
  0x9c   : > { %v3362_v10 = vpop.permute.xlu2 %430 }
  0xa4   : > { %v3378_v30 = vpop.permute.xlu2 %432 }
  0xa5   : > { %v439_v25 = vadd.f32 %v3378_v30, %v328_v34 }
  0xab   : > { %v427_v46 = vpop.permute.xlu1 %426 }
  0xac   : > { %v436_v55 = vadd.f32 %v427_v46, %v325_v35  ;;  %v423_v56 = vpop.permute.xlu0 %422  ;;  %v538_v62 = vpop.permute.xlu2 %537  ;;  %v281_v35 = vadd.f32 %v265_v22, %v238_v54  ;;  %v308_v46 = vsel %vm303_vm1, %v305_v19, %v307_v3  ;;  %v314_v22 = vsel %vm303_vm1, %v311_v40, %v313_v36 }
  0xad   : > { %v240_v3 = vmul.f32 %v3360_v9, %v2920_v1  ;;  %v649_v19 = vmul.f32 %v3422_v21, %v2957_v17  ;;  %v3439_v9 = vmul.f32 %v3427_v58, %v2978_v38  ;;  %v312_v17 = vsel %vm303_vm1, %v309_v23, %v311_v40 }
  0xae   : > { %v3403_v31 = vadd.f32 %v538_v62, %v436_v55  ;;  %v280_v55 = vadd.f32 %v263_v8, %v237_v5  ;;  %v324_v57 = vadd.f32 %v308_v46, %v281_v35  ;;  %v3433_v8 = vmul.f32 %v3422_v21, %v2978_v38 }
  0xaf   : > { %v666_v24 = vrot.slane %v649_v19, 1  ;;  %v3447_v35 = vmul.f32 %v3422_v21, %v2920_v1  ;;  %v710_v46 = vrot.slane %v3439_v9, 2  ;;  %v283_v49 = vadd.f32 %v269_v60, %v240_v3 }
  0xb0   : > { %555 = vadd.xlane.f32.xlu2 %v3403_v31  ;;  %v323_v29 = vadd.f32 %v306_v48, %v280_v55  ;;  %v668_v36 = vrot.slane %v3433_v8, 1  ;;  %v327_v3 = vadd.f32 %v314_v22, %v284_v14  ;;  %v646_v14 = vmul.f32 %v3422_v21, %v2927_v4 }
  0xb1   : > { %v664_v48 = vrot.slane %v3447_v35, 1  ;;  %v711_v1 = vsel %vm303_vm1, %v708_v37, %v710_v46  ;;  %v647_v22 = vmul.f32 %v3422_v21, %v2918_v0  ;;  %v3574_v8 = vstv %s3530_s12  ;;  %s1477_s12 = sld [smem:[#allocation3 + %s1476_s10]] }
  0xb2   : > { %v434_v42 = vadd.f32 %v423_v56, %v323_v29  ;;  %v669_v7 = vsel %vm260_vm0, %v666_v24, %v668_v36  ;;  %v709_v29 = vsel %vm303_vm1, %v706_v15, %v708_v37 }
  0xb3   : > { %v429_v62 = vpop.permute.xlu1 %428  ;;  %v682_v23 = vadd.f32 %v669_v7, %v640_v13  ;;  %v667_v40 = vsel %vm260_vm0, %v664_v48, %v666_v24  ;;  %v438_v13 = vadd.f32 %v3362_v10, %v327_v3  ;;  %v645_v10 = vmul.f32 %v3422_v21, %v2922_v2 }
  0xb4   : > { %v425_v53 = vpop.permute.xlu0 %424  ;;  %v544_v54 = vpop.permute.xlu2 %543  ;;  %v681_v60 = vadd.f32 %v667_v40, %v639_v12  ;;  %v688_v2 = vmul.f32 %v3427_v58, %v2927_v4  ;;  %v637_v3 = vmul.f32 %v3425_v32, %v2927_v4 }
  0xb5   : > { %v435_v5 = vadd.f32 %v425_v53, %v324_v57  ;;  %v3482_v12 = vadd.f32 %v544_v54, %v439_v25  ;;  %v660_v54 = vrot.slane %v646_v14, 1  ;;  %v659_v7 = vrot.slane %v645_v10, 1 }
  0xb6   : > { %v3475_v26 = vadd.f32 %v709_v29, %v681_v60  ;;  %v3510_v60 = vld [vmem:[#allocation7 + $0x10] sm:$0xff] }
  0xb7   : > { %v638_v29 = vmul.f32 %v3510_v60, %v3425_v32 }
  0xbb   : > { %v536_v55 = vpop.permute.xlu1 %535 }
  0xbc   : > { %v3459_v57 = vadd.f32 %v536_v55, %v435_v5  ;;  %v534_v53 = vpop.permute.xlu0 %533  ;;  %v3461_v19 = vpop.permute.xlu2 %819  ;;  %v326_v5 = vadd.f32 %v312_v17, %v283_v49  ;;  %v724_v55 = vadd.f32 %v711_v1, %v682_v23  ;;  %v3504_v1 = vld [vmem:[#allocation7] sm:$0xff] }
  0xbd   : > { %v545_v56 = vadd.f32 %v534_v53, %v434_v42  ;;  %v662_v53 = vrot.slane %v647_v22, 1  ;;  %v687_v23 = vmul.f32 %v3504_v1, %v3427_v58  ;;  %v636_v4 = vmul.f32 %v3504_v1, %v3425_v32 }
  0xbe   : > { %553 = vadd.xlane.f32.xlu1 %v3459_v57  ;;  %v437_v28 = vadd.f32 %v429_v62, %v326_v5  ;;  %v689_v62 = vmul.f32 %v3427_v58, %v2918_v0  ;;  %v702_v5 = vrot.slane %v688_v2, 2  ;;  %v575_v22 = vmul.f32 %v3459_v57, %v3459_v57 }
  0xbf   : > { %v2378_v35 = vpack.c.bf16 %v3459_v57, %v545_v56  ;;  %551 = vadd.xlane.f32.xlu0 %v545_v56  ;;  %v701_v10 = vrot.slane %v687_v23, 2  ;;  %v651_v57 = vmul.f32 %v3422_v21, %v3020_v63  ;;  %v641_v2 = vmul.f32 %v3425_v32, %v2978_v38 }
  0xc0   : > { %v704_v40 = vrot.slane %v689_v62, 2 }
  0xc1   : > { %2379 = vst [vmem:[#allocation2 + $0x30] sm:$0xff] %v2378_v35   ;;  %v663_v35 = vsel %vm260_vm0, %v660_v54, %v662_v53 }
  0xc3   : > { %v542_v24 = vpop.permute.xlu1 %541 }
  0xc4   : > { %v3484_v37 = vadd.f32 %v542_v24, %v438_v13  ;;  %v540_v42 = vpop.permute.xlu0 %539  ;;  %v828_v34 = vpop.permute.xlu2 %827  ;;  %v707_v13 = vsel %vm303_vm1, %v704_v40, %v706_v15 }
  0xc5   : > { %v3486_v30 = vadd.f32 %v540_v42, %v437_v28  ;;  %v3492_v49 = vadd.f32 %v828_v34, %v724_v55  ;;  %v665_v55 = vsel %vm260_vm0, %v662_v53, %v664_v48  ;;  %v576_v28 = vmul.f32 %v3403_v31, %v3403_v31 }
  0xc6   : > { %v2388_v17 = vpack.c.bf16 %v3482_v12, %v3484_v37  ;;  %561 = vadd.xlane.f32.xlu1 %v3482_v12  ;;  %v680_v14 = vadd.f32 %v665_v55, %v638_v29  ;;  %v574_v42 = vmul.f32 %v545_v56, %v545_v56  ;;  %v661_v34 = vsel %vm260_vm0, %v659_v7, %v660_v54  ;;  %v3569_v29 = vld [vmem:[#allocation7 + $0x8] sm:$0xff] }
  0xc7   : > { %v2383_v25 = vpack.c.bf16 %v3486_v30, %v3403_v31  ;;  %557 = vadd.xlane.f32.xlu2 %v3486_v30  ;;  %559 = vadd.xlane.f32.xlu0 %v3484_v37  ;;  %v679_v48 = vadd.f32 %v663_v35, %v637_v3  ;;  %v705_v31 = vsel %vm303_vm1, %v702_v5, %v704_v40  ;;  %v3545_v53 = vstv %s3515_s7  ;;  %s1434_s7 = sadd.s32 3, %s3153_s6 }
  0xc8   : > { %2496 = vst [vmem:[#allocation2 + $0x58] sm:$0xff] %v2388_v17   ;;  %v2354_v0 = vld [vmem:[#allocation2 + $0x30] sm:$0xff]  ;;  %v722_v15 = vadd.f32 %v707_v13, %v680_v14  ;;  %v678_v62 = vadd.f32 %v661_v34, %v636_v4  ;;  %v703_v56 = vsel %vm303_vm1, %v701_v10, %v702_v5  ;;  %v693_v17 = vmul.f32 %v3427_v58, %v3020_v63  ;;  %s1435_s9 = sld [smem:[#allocation3 + %s1434_s7]] }
  0xc9   : > { %2495 = vst [vmem:[#allocation2] sm:$0xff] %v2383_v25   ;;  %1988 = vmatmul.bf16.vlgmr.msra.gmra.mxu0 %v2354_v0  ;;  %v721_v25 = vadd.f32 %v705_v31, %v679_v48  ;;  %v670_v7 = vrot.slane %v651_v57, 1  ;;  %v579_v40 = vmul.f32 %v3482_v12, %v3482_v12  ;;  %v578_v3 = vmul.f32 %v3484_v37, %v3484_v37 }
  0xca   : > { %v712_v21 = vrot.slane %v693_v17, 2  ;;  %v720_v23 = vadd.f32 %v703_v56, %v678_v62  ;;  %v577_v38 = vmul.f32 %v3486_v30, %v3486_v30  ;;  %v1245_v37 = vmul.f32 %v3504_v1, %v3545_v53 }
  0xcb   : > { %v671_v58 = vsel %vm260_vm0, %v668_v36, %v670_v7  ;;  %v3578_v55 = vstv %s3532_s13  ;;  %v3581_v13 = vstv %s3537_s14  ;;  %v1288_v14 = vmul.f32 %v3569_v29, %v3574_v8 }
  0xcc   : > { %v822_v24 = vpop.permute.xlu0 %821  ;;  %v713_v12 = vsel %vm303_vm1, %v710_v46, %v712_v21  ;;  %v683_v30 = vadd.f32 %v671_v58, %v641_v2  ;;  %v933_v36 = vpop.permute.xlu2 %932  ;;  %v831_v35 = vadd.f32 %v3461_v19, %v720_v23  ;;  %v3591_v34 = vmul.f32 %v3510_v60, %v3545_v53  ;;  %v3624_v58 = vld [vmem:[#allocation7 + $0x18] sm:$0xff] }
  0xcd   : > { %v832_v5 = vadd.f32 %v822_v24, %v721_v25  ;;  %v1287_v24 = vmul.f32 %v3504_v1, %v3574_v8  ;;  %v1641_v48 = vmul.f32 %v3504_v1, %v3581_v13  ;;  %v3600_v31 = vstv %s3553_s20  ;;  %s221_s20 = sand.u32 1, %s2776_s16  }
  0xce   : > { %584 = vadd.xlane.f32.xlu1 %v576_v28  ;;  %v725_v46 = vadd.f32 %v713_v12, %v683_v30  ;;  %v1259_v28 = vrot.slane %v1245_v37, 1  ;;  %v1236_v57 = vmul.f32 %v3504_v1, %v3578_v55  ;;  %v1302_v25 = vrot.slane %v1288_v14, 2  ;;  %s4177_s22 = smul.u32 96, %s221_s20 }
  0xcf   : > { %582 = vadd.xlane.f32.xlu0 %v575_v22  ;;  %580 = vadd.xlane.f32.xlu2 %v574_v42  ;;  %v3587_v42 = vadd.f32 %v933_v36, %v832_v5  ;;  %v1301_v17 = vrot.slane %v1287_v24, 2  ;;  %v4341_v7 = vrot.slane %v3591_v34, 1  ;;  %v1683_v21 = vmul.f32 %v3504_v1, %v3600_v31 }
  0xd0   : > { %v824_v54 = vpop.permute.xlu1 %823  ;;  %v2355_v9 = vld [vmem:[#allocation2] sm:$0xff]  ;;  %v1684_v23 = vmul.f32 %v3569_v29, %v3600_v31  ;;  %v1137_v12 = vmul.f32 %v3624_v58, %v3276_v44  ;;  %v1237_v30 = vmul.f32 %v3569_v29, %v3578_v55  ;;  %v3641_v14 = vmul.f32 %v3510_v60, %v3600_v31 }
  0xd1   : > { %v3547_v0 = vadd.f32 %v824_v54, %v722_v15  ;;  %v1642_v15 = vmul.f32 %v3569_v29, %v3581_v13  ;;  %v3609_v54 = vmul.f32 %v3510_v60, %v3574_v8  ;;  %v1128_v18 = vmul.f32 %v3624_v58, %v3273_v43 }
  0xd3   : > { %v4343_v5 = vrot.slane %v3609_v54, 2 }
  0xd4   : > { %v826_v63 = vpop.permute.xlu0 %825 }
  0xd5   : > { %v3558_v32 = vadd.f32 %v826_v63, %v3475_v26  ;;  %v1246_v26 = vmul.f32 %v3569_v29, %v3545_v53  ;;  %v1656_v63 = vrot.slane %v1642_v15, 1 }
  0xd6   : > { %590 = vadd.xlane.f32.xlu1 %v579_v40  ;;  %v3618_v40 = vstv %s1630_s28  ;;  %s4199_s28 = scalar_lea.vmem [#allocation10], %s4177_s22 }
  0xd7   : > { %588 = vadd.xlane.f32.xlu0 %v578_v3  ;;  %586 = vadd.xlane.f32.xlu2 %v577_v38  ;;  %v1260_v4 = vrot.slane %v1246_v26, 1  ;;  %v1655_v3 = vrot.slane %v1641_v48, 1  ;;  %v3622_v38 = vmul.f32 %v3510_v60, %v3581_v13  ;;  %v1303_v26 = vsel %vm303_vm1, %v1301_v17, %v1302_v25 }
  0xd8   : > { %v830_v22 = vpop.permute.xlu1 %829  ;;  %v1632_v36 = vmul.f32 %v3504_v1, %v3618_v40  ;;  %v1179_v48 = vmul.f32 %v3624_v58, %v3279_v45  ;;  %v1533_v17 = vmul.f32 %v3624_v58, %v3252_v33 }
  0xd9   : > { %1993 = vmatmul.bf16.gmra.mxu0 %v2355_v9  ;;  %v3593_v19 = vadd.f32 %v830_v22, %v725_v46  ;;  %v1261_v56 = vsel %vm260_vm0, %v1259_v28, %v1260_v4  ;;  %v1263_v9 = vsel %vm260_vm0, %v1260_v4, %v4341_v7  ;;  %v1697_v46 = vrot.slane %v1683_v21, 2  ;;  %v3643_v22 = vld [vmem:[#allocation7 + $0x20] sm:$0xff] }
  0xda   : > { %v1278_v37 = vadd.f32 %v1261_v56, %v1236_v57  ;;  %v1657_v28 = vsel %vm260_vm0, %v1655_v3, %v1656_v63  ;;  %v4342_v24 = vrot.slane %v3622_v38, 1  ;;  %v1153_v4 = vrot.slane %v1137_v12, 1  ;;  %v2356_v12 = vld [vmem:[#allocation2 + $0x58] sm:$0xff] }
  0xdb   : > { %v1279_v57 = vadd.f32 %v1263_v9, %v1237_v30  ;;  %v1305_v56 = vsel %vm303_vm1, %v1302_v25, %v4343_v5  ;;  %v1127_v3 = vmul.f32 %v3510_v60, %v3273_v43  ;;  %v1700_v25 = vrot.slane %v3641_v14, 2 }
  0xdc   : > { %v931_v10 = vpop.permute.xlu0 %930  ;;  %v1320_v15 = vadd.f32 %v1303_v26, %v1278_v37  ;;  %v1659_v37 = vsel %vm260_vm0, %v1656_v63, %v4342_v24  ;;  %v3668_v30 = vmul.f32 %v3643_v22, %v3279_v45  ;;  %v1154_v9 = vsel %vm260_vm0, %v1151_v11, %v1153_v4 }
  0xdd   : > { %v3602_v62 = vadd.f32 %v931_v10, %v831_v35  ;;  %v1698_v35 = vrot.slane %v1684_v23, 2  ;;  %v3647_v10 = vmul.f32 %v3643_v22, %v3276_v44  ;;  %v1633_v23 = vmul.f32 %v3569_v29, %v3618_v40 }
  0xde   : > { %v1549_v63 = vrot.slane %v1533_v17, 1  ;;  %v3677_v24 = vmul.f32 %v3643_v22, %v3252_v33  ;;  %v1248_v11 = vmul.f32 %v3624_v58, %v3545_v53  ;;  %v1523_v17 = vmul.f32 %v3510_v60, %v3268_v41 }
  0xdf   : > { %v2393_v2 = vpack.c.bf16 %v3587_v42, %v3602_v62  ;;  %v1699_v21 = vsel %vm303_vm1, %v1697_v46, %v1698_v35  ;;  %v4345_v26 = vrot.slane %v3647_v10, 1  ;;  %v1575_v46 = vmul.f32 %v3624_v58, %v3284_v51 }
  0xe0   : > { %v1675_v16 = vadd.f32 %v1659_v37, %v1633_v23  ;;  %v1290_v37 = vmul.f32 %v3624_v58, %v3574_v8 }
  0xe1   : > { %2497 = vst [vmem:[#allocation2 + $0x18] sm:$0xff] %v2393_v2   ;;  %v1674_v2 = vadd.f32 %v1657_v28, %v1632_v36  ;;  %v1195_v36 = vrot.slane %v1179_v48, 2  ;;  %v1321_v28 = vadd.f32 %v1305_v56, %v1279_v57  ;;  %v1701_v48 = vsel %vm303_vm1, %v1698_v35, %v1700_v25 }
  0xe2   : > { %v1156_v57 = vsel %vm260_vm0, %v1153_v4, %v4345_v26  ;;  %v1197_v56 = vrot.slane %v3668_v30, 2  ;;  %v4356_v35 = vrot.slane %v3302_v50, 1  ;;  %v4350_v4 = vrot.slane %v3677_v24, 1 }
  0xe3   : > { %v1716_v5 = vadd.f32 %v1699_v21, %v1674_v2  ;;  %v1591_v2 = vrot.slane %v1575_v46, 2  ;;  %v3698_v21 = vmul.f32 %v3643_v22, %v3284_v51  ;;  %v1717_v20 = vadd.f32 %v1701_v48, %v1675_v16 }
  0xe4   : > { %v1550_v23 = vsel %vm260_vm0, %v4356_v35, %v1549_v63  ;;  %v1198_v50 = vsel %vm303_vm1, %v1195_v36, %v1197_v56  ;;  %v4357_v35 = vrot.slane %v3311_v59, 2  ;;  %v4358_v48 = vrot.slane %v3591_v34, 1 }
  0xe5   : > { %v1565_v46 = vadd.f32 %v1550_v23, %v1523_v17  ;;  %v4349_v16 = vrot.slane %v3698_v21, 2 }
  0xe6   : > { %v1592_v26 = vsel %vm303_vm1, %v4357_v35, %v1591_v2  ;;  %v1239_v35 = vmul.f32 %v3624_v58, %v3578_v55 }
  0xe7   : > { %v1607_v17 = vadd.f32 %v1592_v26, %v1565_v46  ;;  %v4359_v26 = vrot.slane %v3609_v54, 2 }
  0xe8   : > { %v2357_v7 = vld [vmem:[#allocation2 + $0x18] sm:$0xff] }
  0xe9   : > { %1998 = vmatmul.bf16.gmra.mxu0 %v2356_v12  ;;  %2003 = vmatmul.bf16.vlgmr.msra.gmra.mxu1 %v2357_v7  ;;  %v1169_v7 = vadd.f32 %v1154_v9, %v1127_v3  ;;  %v3706_v3 = vmul.f32 %v3643_v22, %v3545_v53  ;;  %v1264_v12 = vrot.slane %v1248_v11, 1 }
  0xeb   : > { %1326 = vrot.lane.b32.xlu0 %v1320_v15, %s2794_s11  ;;  %v1196_v15 = vsel %vm303_vm1, %v1193_v27, %v1195_v36  ;;  %v1170_v27 = vadd.f32 %v1156_v57, %v1128_v18  ;;  %v1238_v18 = vmul.f32 %v3510_v60, %v3578_v55  ;;  %v4348_v11 = vrot.slane %v3706_v3, 1 }
  0xec   : > { %v1211_v9 = vadd.f32 %v1196_v15, %v1169_v7  ;;  %v3729_v36 = vmul.f32 %v3643_v22, %v3574_v8  ;;  %v1265_v7 = vsel %vm260_vm0, %v4358_v48, %v1264_v12  ;;  %v1306_v57 = vrot.slane %v1290_v37, 2 }
  0xed   : > { %v1212_v59 = vadd.f32 %v1198_v50, %v1170_v27  ;;  %v3739_v15 = vmul.f32 %v3643_v22, %v3581_v13  ;;  %v1280_v34 = vadd.f32 %v1265_v7, %v1238_v18  ;;  %v1267_v27 = vsel %vm260_vm0, %v1264_v12, %v4348_v11 }
  0xee   : > { %v4346_v37 = vrot.slane %v3729_v36, 2  ;;  %v1307_v50 = vsel %vm303_vm1, %v4359_v26, %v1306_v57  ;;  %v1281_v18 = vadd.f32 %v1267_v27, %v1239_v35  ;;  %v1634_v48 = vmul.f32 %v3510_v60, %v3618_v40 }
  0xef   : > { %1328 = vrot.lane.b32.xlu2 %v1321_v28, %s2794_s11  ;;  %1722 = vrot.lane.b32.xlu1 %v1716_v5, %s2794_s11  ;;  %v1524_v28 = vmul.f32 %v3624_v58, %v3268_v41  ;;  %v1552_v5 = vsel %vm260_vm0, %v1549_v63, %v4350_v4  ;;  %v1644_v63 = vmul.f32 %v3624_v58, %v3581_v13  ;;  %v4347_v12 = vrot.slane %v3739_v15, 1 }
  0xf0   : > { %v1309_v54 = vsel %vm303_vm1, %v1306_v57, %v4346_v37  ;;  %v3771_v7 = vmul.f32 %v3643_v22, %v3166_v39  ;;  %v1635_v35 = vmul.f32 %v3624_v58, %v3618_v40  ;;  %v894_v27 = vmul.f32 %v3624_v58, %v3180_v47 }
  0xf1   : > { %v1566_v23 = vadd.f32 %v1552_v5, %v1524_v28  ;;  %v1660_v46 = vrot.slane %v1644_v63, 1  ;;  %v1686_v28 = vmul.f32 %v3624_v58, %v3600_v31  ;;  %v852_v5 = vmul.f32 %v3624_v58, %v3166_v39 }
  0xf2   : > { %v4360_v63 = vrot.slane %v3622_v38, 1  ;;  %v842_v37 = vmul.f32 %v3510_v60, %v3186_v52 }
  0xf3   : > { %1724 = vrot.lane.b32.xlu0 %v1717_v20, %s2794_s11  ;;  %v1594_v20 = vsel %vm303_vm1, %v1591_v2, %v4349_v16  ;;  %v3759_v2 = vmul.f32 %v3643_v22, %v3600_v31  ;;  %v1663_v57 = vsel %vm260_vm0, %v1660_v46, %v4347_v12  ;;  %v910_v16 = vrot.slane %v894_v27, 2 }
  0xf4   : > { %v1661_v26 = vsel %vm260_vm0, %v4360_v63, %v1660_v46  ;;  %v4351_v46 = vrot.slane %v3771_v7, 1 }
  0xf5   : > { %v1676_v63 = vadd.f32 %v1661_v26, %v1634_v48  ;;  %v4361_v26 = vrot.slane %v3231_v61, 1 }
  0xf7   : > { %1219 = vrot.lane.b32.xlu2 %v1211_v9, %s2793_s29  ;;  %1221 = vrot.lane.b32.xlu1 %v1212_v59, %s2793_s29  ;;  %v1608_v9 = vadd.f32 %v1594_v20, %v1566_v23  ;;  %v1322_v59 = vadd.f32 %v1307_v50, %v1280_v34  ;;  %v1702_v23 = vrot.slane %v1686_v28, 2  ;;  %v1704_v20 = vrot.slane %v3759_v2, 2  ;;  %v3785_v50 = vld [vmem:[#allocation7 + $0x28] sm:$0xff] }
  0xf8   : > { %v868_v34 = vrot.slane %v852_v5, 1  ;;  %v1139_v38 = vmul.f32 %v3785_v50, %v3276_v44  ;;  %v3791_v28 = vmul.f32 %v3643_v22, %v3180_v47  ;;  %v3796_v5 = vld [vmem:[#allocation7 + $0x30] sm:$0x3] }
  0xf9   : > { %v1140_v12 = vmul.f32 %v3796_v5, %v3276_v44  ;;  %v1705_v48 = vsel %vm303_vm1, %v1702_v23, %v1704_v20  ;;  %v1181_v44 = vmul.f32 %v3785_v50, %v3279_v45 }
  0xfa   : > { %v869_v11 = vsel %vm260_vm0, %v4361_v26, %v868_v34  ;;  %v1157_v4 = vrot.slane %v1139_v38, 1  ;;  %v912_v14 = vrot.slane %v3791_v28, 2  ;;  %v871_v61 = vsel %vm260_vm0, %v868_v34, %v4351_v46 }
  0xfb   : > { %1615 = vrot.lane.b32.xlu0 %v1607_v17, %s2793_s29  ;;  %v1323_v17 = vadd.f32 %v1309_v54, %v1281_v18  ;;  %v1703_v18 = vsel %vm303_vm1, %v1700_v25, %v1702_v23  ;;  %v1677_v54 = vadd.f32 %v1663_v57, %v1635_v35  ;;  %v1182_v25 = vmul.f32 %v3796_v5, %v3279_v45 }
  0xfc   : > { %v1159_v23 = vrot.slane %v1140_v12, 1  ;;  %v1535_v35 = vmul.f32 %v3785_v50, %v3252_v33  ;;  %v884_v27 = vadd.f32 %v869_v11, %v842_v37  ;;  %v1129_v38 = vmul.f32 %v3643_v22, %v3273_v43 }
  0xfd   : > { %v1719_v57 = vadd.f32 %v1705_v48, %v1677_v54  ;;  %v1536_v26 = vmul.f32 %v3796_v5, %v3252_v33  ;;  %v4362_v45 = vrot.slane %v3241_v6, 2  ;;  %v4363_v34 = vrot.slane %v3647_v10, 1 }
  0xfe   : > { %v913_v11 = vsel %vm303_vm1, %v910_v16, %v912_v14  ;;  %v1130_v37 = vmul.f32 %v3785_v50, %v3273_v43  ;;  %v1160_v33 = vsel %vm260_vm0, %v1157_v4, %v1159_v23  ;;  %v1553_v54 = vrot.slane %v1535_v35, 1 }
  0xff   : > { %1617 = vrot.lane.b32.xlu2 %v1608_v9, %s2793_s29  ;;  %1330 = vrot.lane.b32.xlu1 %v1322_v59, %s2794_s11  ;;  %v843_v9 = vmul.f32 %v3624_v58, %v3186_v52  ;;  %v1718_v59 = vadd.f32 %v1703_v18, %v1676_v63  ;;  %v911_v63 = vsel %vm303_vm1, %v4362_v45, %v910_v16  ;;  %v1199_v18 = vrot.slane %v1181_v44, 2 }
 0x100   : > { %v1158_v12 = vsel %vm260_vm0, %v4363_v34, %v1157_v4  ;;  %v1577_v6 = vmul.f32 %v3785_v50, %v3284_v51  ;;  %v1250_v10 = vmul.f32 %v3785_v50, %v3545_v53  ;;  %v926_v48 = vadd.f32 %v911_v63, %v884_v27 }
 0x101   : > { %v885_v46 = vadd.f32 %v871_v61, %v843_v9  ;;  %v1171_v44 = vadd.f32 %v1158_v12, %v1129_v38  ;;  %v1555_v16 = vrot.slane %v1536_v26, 1  ;;  %v1578_v43 = vmul.f32 %v3796_v5, %v3284_v51 }
 0x102   : > { %v1200_v4 = vsel %vm303_vm1, %v1197_v56, %v1199_v18  ;;  %v1525_v9 = vmul.f32 %v3643_v22, %v3268_v41  ;;  %v1172_v61 = vadd.f32 %v1160_v33, %v1130_v37  ;;  %v1292_v23 = vmul.f32 %v3785_v50, %v3574_v8 }
 0x103   : > { %1332 = vrot.lane.b32.xlu0 %v1323_v17, %s2794_s11  ;;  %v1201_v17 = vrot.slane %v1182_v25, 2  ;;  %v927_v25 = vadd.f32 %v913_v11, %v885_v46  ;;  %v1595_v30 = vrot.slane %v1577_v6, 2  ;;  %v1268_v27 = vrot.slane %v1250_v10, 1 }
 0x104   : > { %v1213_v56 = vadd.f32 %v1200_v4, %v1171_v44  ;;  %v1556_v46 = vsel %vm260_vm0, %v1553_v54, %v1555_v16  ;;  %v1597_v38 = vrot.slane %v1578_v43, 2  ;;  %v1646_v26 = vmul.f32 %v3785_v50, %v3581_v13 }
 0x105   : > { %v1202_v35 = vsel %vm303_vm1, %v1199_v18, %v1201_v17  ;;  %v1310_v34 = vrot.slane %v1292_v23, 2  ;;  %v4365_v12 = vrot.slane %v3698_v21, 2  ;;  %v4366_v37 = vrot.slane %v3706_v3, 1 }
 0x106   : > { %v1214_v45 = vadd.f32 %v1202_v35, %v1172_v61  ;;  %v1598_v33 = vsel %vm303_vm1, %v1595_v30, %v1597_v38  ;;  %v1688_v21 = vmul.f32 %v3785_v50, %v3600_v31  ;;  %v1647_v6 = vmul.f32 %v3796_v5, %v3581_v13 }
 0x107   : > { %1726 = vrot.lane.b32.xlu2 %v1718_v59, %s2794_s11  ;;  %1728 = vrot.lane.b32.xlu1 %v1719_v57, %s2794_s11  ;;  %v1526_v59 = vmul.f32 %v3785_v50, %v3268_v41  ;;  %v4364_v57 = vrot.slane %v3677_v24, 1  ;;  %v1251_v41 = vmul.f32 %v3796_v5, %v3545_v53  ;;  %v1240_v24 = vmul.f32 %v3643_v22, %v3578_v55 }
 0x108   : > { %v1596_v18 = vsel %vm303_vm1, %v4365_v12, %v1595_v30  ;;  %v1269_v17 = vsel %vm260_vm0, %v4366_v37, %v1268_v27  ;;  %v1293_v53 = vmul.f32 %v3796_v5, %v3574_v8  ;;  %v1664_v10 = vrot.slane %v1646_v26, 1  ;;  %v3925_v37 = vpop.permute.xlu1 %1215 }
 0x109   : > { %v1554_v51 = vsel %vm260_vm0, %v4364_v57, %v1553_v54  ;;  %v1568_v11 = vadd.f32 %v1556_v46, %v1526_v59  ;;  %v1270_v54 = vrot.slane %v1251_v41, 1  ;;  %v4367_v44 = vrot.slane %v3729_v36, 2 }
 0x10a   : > { %v1567_v63 = vadd.f32 %v1554_v51, %v1525_v9  ;;  %v1241_v43 = vmul.f32 %v3785_v50, %v3578_v55  ;;  %v1312_v4 = vrot.slane %v1293_v53, 2  ;;  %v1636_v9 = vmul.f32 %v3643_v22, %v3618_v40 }
 0x10b   : > { %934 = vrot.lane.b32.xlu0 %v926_v48, %s2794_s11  ;;  %v1282_v48 = vadd.f32 %v1269_v17, %v1240_v24  ;;  %v1311_v8 = vsel %vm303_vm1, %v4367_v44, %v1310_v34  ;;  %v1610_v16 = vadd.f32 %v1598_v33, %v1568_v11  ;;  %v1706_v13 = vrot.slane %v1688_v21, 2 }
 0x10c   : > { %v1609_v3 = vadd.f32 %v1596_v18, %v1567_v63  ;;  %v1666_v61 = vrot.slane %v1647_v6, 1  ;;  %v1689_v59 = vmul.f32 %v3796_v5, %v3600_v31  ;;  %v4368_v36 = vrot.slane %v3739_v15, 1 }
 0x10d   : > { %v854_v55 = vmul.f32 %v3785_v50, %v3166_v39  ;;  %v855_v35 = vmul.f32 %v3796_v5, %v3166_v39  ;;  %v1324_v57 = vadd.f32 %v1311_v8, %v1282_v48  ;;  %v1313_v30 = vsel %vm303_vm1, %v1310_v34, %v1312_v4 }
 0x10e   : > { %v1665_v23 = vsel %vm260_vm0, %v4368_v36, %v1664_v10  ;;  %v1707_v15 = vsel %vm303_vm1, %v1704_v20, %v1706_v13  ;;  %v1708_v46 = vrot.slane %v1689_v59, 2  ;;  %v896_v38 = vmul.f32 %v3785_v50, %v3180_v47 }
 0x10f   : > { %936 = vrot.lane.b32.xlu2 %v927_v25, %s2794_s11  ;;  %1223 = vrot.lane.b32.xlu1 %v1213_v56, %s2793_s29  ;;  %v1271_v25 = vsel %vm260_vm0, %v1268_v27, %v1270_v54  ;;  %v1637_v27 = vmul.f32 %v3785_v50, %v3618_v40  ;;  %v1678_v31 = vadd.f32 %v1665_v23, %v1636_v9  ;;  %v872_v39 = vrot.slane %v854_v55, 1 }
 0x110   : > { %v1283_v51 = vadd.f32 %v1271_v25, %v1241_v43  ;;  %v1667_v56 = vsel %vm260_vm0, %v1664_v10, %v1666_v61  ;;  %v874_v41 = vrot.slane %v855_v35, 1  ;;  %v897_v40 = vmul.f32 %v3796_v5, %v3180_v47  ;;  %v3936_v6 = vpop.permute.xlu1 %1613  ;;  %v3938_v10 = vpop.permute.xlu2 %1611 }
 0x111   : > { %v1720_v2 = vadd.f32 %v1707_v15, %v1678_v31  ;;  %v1679_v63 = vadd.f32 %v1667_v56, %v1637_v27  ;;  %v1709_v20 = vsel %vm303_vm1, %v1706_v13, %v1708_v46  ;;  %v845_v24 = vmul.f32 %v3785_v50, %v3186_v52 }
 0x112   : > { %v1325_v26 = vadd.f32 %v1313_v30, %v1283_v51  ;;  %v4369_v34 = vrot.slane %v3771_v7, 1  ;;  %v914_v18 = vrot.slane %v896_v38, 2  ;;  %v875_v47 = vsel %vm260_vm0, %v872_v39, %v874_v41 }
 0x113   : > { %1225 = vrot.lane.b32.xlu0 %v1214_v45, %s2793_s29  ;;  %v844_v45 = vmul.f32 %v3643_v22, %v3186_v52  ;;  %v916_v11 = vrot.slane %v897_v40, 2  ;;  %v1721_v17 = vadd.f32 %v1709_v20, %v1679_v63  ;;  %v887_v33 = vadd.f32 %v875_v47, %v845_v24 }
 0x114   : > { %v873_v12 = vsel %vm260_vm0, %v4369_v34, %v872_v39  ;;  %v915_v52 = vsel %vm303_vm1, %v912_v14, %v914_v18  ;;  %v3951_v30 = vstv %s1081_s5  ;;  %v3966_v41 = vstv %s1030_s8  ;;  %s2162_s8 = scalar_lea.sflag [#allocation5], %s221_s20 }
 0x115   : > { %v886_v53 = vadd.f32 %v873_v12, %v844_v45  ;;  %v917_v7 = vsel %vm303_vm1, %v914_v18, %v916_v11  ;;  %v1084_v46 = vmul.f32 %v3569_v29, %v3951_v30  ;;  %v1083_v39 = vmul.f32 %v3504_v1, %v3951_v30 }
 0x116   : > { %v929_v21 = vadd.f32 %v917_v7, %v887_v33  ;;  %v3970_v63 = vstv %s1435_s9  ;;  %v3975_v34 = vmul.f32 %v3510_v60, %v3951_v30  ;;  %v1032_v11 = vmul.f32 %v3504_v1, %v3966_v41 }
 0x117   : > { %1619 = vrot.lane.b32.xlu2 %v1609_v3, %s2793_s29  ;;  %1621 = vrot.lane.b32.xlu1 %v1610_v16, %s2793_s29  ;;  %v928_v54 = vadd.f32 %v915_v52, %v886_v53  ;;  %v3940_v3 = vpop.permute.xlu0 %1217  ;;  %s1038_s29 = sadd.s32 3, %s3171_s23  ;;  %s3964_s23 = sld [smem:[#allocation3 + %s3153_s6]]  ;;  %v1098_v47 = vrot.slane %v1084_v46, 2  ;;  %v1437_v52 = vmul.f32 %v3504_v1, %v3970_v63  ;;  %v1438_v7 = vmul.f32 %v3569_v29, %v3970_v63 }
 0x118   : > { %s2730_s6 = scalar_lea.hbm %s4337_s4, 384 }
 0x11b   : > { %1334 = vrot.lane.b32.xlu0 %v1324_v57, %s2794_s11 }
 0x11f   : > { %1336 = vrot.lane.b32.xlu2 %v1325_v26, %s2794_s11  ;;  %1730 = vrot.lane.b32.xlu1 %v1720_v2, %s2794_s11 }
 0x123   : > { %1732 = vrot.lane.b32.xlu0 %v1721_v17, %s2794_s11  ;;  %v556_v14 = vpop.xlane.xlu2 %555  ;;  %v1097_v17 = vrot.slane %v1083_v39, 2 }
 0x127   : > { %938 = vrot.lane.b32.xlu2 %v928_v54, %s2794_s11  ;;  %940 = vrot.lane.b32.xlu1 %v929_v21, %s2794_s11  ;;  %s1039_s11 = sld [smem:[#allocation3 + %s1038_s29]]  ;;  %v3985_v21 = vstv %s1477_s12  ;;  %s2374_s29 = smul.u32 96, %s2843_s19 }
 0x128   : > { %s2174_s19 = sshll.u32 %s4199_s28, 4  ;;  %s2175_s19 = int_to_ptr.vmem [resolvable:$true] %s2174_s19 }
 0x129   : > { %s2173_s5 = scalar_lea.hbm %s4337_s4, %s2374_s29 }
 0x12a   : > { %s2176_s7 = sshll.u32 %s2173_s5, 4  ;;  %s2177_s7 = int_to_ptr.hbm [resolvable:$true] %s2176_s7 }
 0x12b   : > { %s2724_s9 = sshra.s32 %s2177_s7, 4  ;;  %s2725_s9 = int_to_ptr.hbm [resolvable:$true] %s2724_s9 }
 0x12c   : > { %s2726_s10 = scalar_lea.hbm %s2725_s9, 96  ;;  %p2731_p2 = scmp.lt.s32.totalorder %s2725_s9, %s4337_s4 }
 0x12d   : > { %v3946_v23 = vstv %s1039_s11  ;;  %p2727_p13 = scmp.ne.s32.totalorder %s2725_s9, %s2726_s10  ;;  %p2732_p3 = scmp.lt.s32.totalorder %s2730_s6, %s2726_s10 }
 0x12e   : > { %v1042_v51 = vmul.f32 %v3569_v29, %v3946_v23  ;;  %v1041_v27 = vmul.f32 %v3504_v1, %v3946_v23  ;;  %v3957_v31 = vmul.f32 %v3510_v60, %v3946_v23 }
 0x12f   : > { %p2728_p0 = pnand %p2727_p13, %p2860_p5  ;;  %p2733_p4 = por %p2732_p3, %p2731_p2 }
 0x130   : > { %v1056_v40 = vrot.slane %v1042_v51, 1  ;;  %v1055_v26 = vrot.slane %v1041_v27, 1  ;;  %v1058_v24 = vrot.slane %v3957_v31, 1 }
 0x131   : > { %v554_v28 = vpop.xlane.xlu1 %553  ;;  %p2729_p1 = pneg %p2728_p0 }
 0x132   : > { %v552_v48 = vpop.xlane.xlu0 %551  ;;  %v1057_v33 = vsel %vm260_vm0, %v1055_v26, %v1056_v40 }
 0x133   : > { %v563_v44 = vadd.f32 %v554_v28, %v552_v48  ;;  %v3989_v28 = vmul.f32 %v3510_v60, %v3970_v63  ;;  %v1059_v48 = vsel %vm260_vm0, %v1056_v40, %v1058_v24  ;;  %p2734_p7 = pnand %p2733_p4, %p2729_p1 }
 0x135   : > { %v564_v16 = vadd.f32 %v563_v44, %v556_v14  ;;  %v1033_v14 = vmul.f32 %v3569_v29, %v3966_v41  ;;  %v1100_v44 = vrot.slane %v3975_v34, 2  ;;  %v1454_v51 = vrot.slane %v3989_v28, 1 }
 0x137   : > { %v1101_v27 = vsel %vm303_vm1, %v1098_v47, %v1100_v44 }
 0x139   : > { %v562_v8 = vpop.xlane.xlu1 %561 }
 0x13a   : > { %v558_v43 = vpop.xlane.xlu2 %557  ;;  %v560_v4 = vpop.xlane.xlu0 %559 }
 0x13b   : > { %v565_v9 = vadd.f32 %v564_v16, %v558_v43  ;;  %v1074_v43 = vadd.f32 %v1057_v33, %v1032_v11 }
 0x13d   : > { %v566_v25 = vadd.f32 %v565_v9, %v560_v4  ;;  %v3999_v4 = vstv %s3964_s23 }
 0x13f   : > { %v567_v13 = vadd.f32 %v566_v25, %v562_v8  ;;  %v1099_v25 = vsel %vm303_vm1, %v1097_v17, %v1098_v47 }
 0x140   : > { %v1116_v39 = vadd.f32 %v1099_v25, %v1074_v43 }
 0x141   : > { %v568_v61 = vrot.slane %v567_v13, 4  ;;  %v585_v55 = vpop.xlane.xlu1 %584 }
 0x142   : > { %v583_v59 = vpop.xlane.xlu0 %582  ;;  %v581_v36 = vpop.xlane.xlu2 %580 }
 0x143   : > { %v569_v35 = vadd.f32 %v568_v61, %v567_v13  ;;  %v592_v57 = vadd.f32 %v583_v59, %v581_v36  ;;  %v1451_v13 = vrot.slane %v1437_v52, 1  ;;  %v1452_v61 = vrot.slane %v1438_v7, 1 }
 0x144   : > { %v1479_v36 = vmul.f32 %v3504_v1, %v3985_v21  ;;  %v1227_v52 = vadd.f32 %v3925_v37, %v1116_v39  ;;  %v1044_v37 = vmul.f32 %v3624_v58, %v3946_v23 }
 0x145   : > { %v570_v15 = vrot.slane %v569_v35, 2  ;;  %v593_v56 = vadd.f32 %v592_v57, %v585_v55  ;;  %v1480_v55 = vmul.f32 %v3569_v29, %v3985_v21  ;;  %v1075_v57 = vadd.f32 %v1059_v48, %v1033_v14 }
 0x146   : > { %v3968_v45 = vpop.f32.mrf.mxu0  ;;  %v1453_v40 = vsel %vm260_vm0, %v1451_v13, %v1452_v61 }
 0x147   : > { %v571_v12 = vadd.f32 %v570_v15, %v569_v35  ;;  %v4008_v35 = vmul.f32 %v3510_v60, %v3985_v21  ;;  %v1117_v11 = vadd.f32 %v1101_v27, %v1075_v57 }
 0x149   : > { %v591_v53 = vpop.xlane.xlu1 %590  ;;  %v572_v8 = vrot.slane %v571_v12, 1  ;;  %v1496_v47 = vrot.slane %v4008_v35, 2  ;;  %v1228_v14 = vadd.f32 %v3940_v3, %v1117_v11  ;;  %v1034_v11 = vmul.f32 %v3510_v60, %v3966_v41 }
 0x14a   : > { %v587_v38 = vpop.xlane.xlu2 %586  ;;  %v589_v20 = vpop.xlane.xlu0 %588 }
 0x14b   : > { %v594_v2 = vadd.f32 %v593_v56, %v587_v38  ;;  %v573_v15 = vadd.f32 %v572_v8, %v571_v12  ;;  %v1428_v38 = vmul.f32 %v3504_v1, %v3999_v4  ;;  %v1455_v12 = vsel %vm260_vm0, %v1452_v61, %v1454_v51 }
 0x14d   : > { %v595_v18 = vadd.f32 %v594_v2, %v589_v20  ;;  %948 = vadd.xlane.f32.xlu0 %v3602_v62  ;;  %v1493_v2 = vrot.slane %v1479_v36, 2  ;;  %v1494_v20 = vrot.slane %v1480_v55, 2  ;;  %v4025_v17 = vmul.f32 0.0015432099, %v573_v15 }
 0x14e   : > { %v4014_v46 = vpop.f32.mrf.mxu0  ;;  %v1470_v7 = vadd.f32 %v1453_v40, %v1428_v38  ;;  %v1060_v15 = vrot.slane %v1044_v37, 1  ;;  %v1440_v40 = vmul.f32 %v3624_v58, %v3970_v63 }
 0x14f   : > { %v596_v54 = vadd.f32 %v595_v18, %v591_v53  ;;  %v1429_v18 = vmul.f32 %v3569_v29, %v3999_v4  ;;  %v1495_v29 = vsel %vm303_vm1, %v1493_v2, %v1494_v20  ;;  %v1497_v48 = vsel %vm303_vm1, %v1494_v20, %v1496_v47 }
 0x150   : > { %950 = vadd.xlane.f32.xlu2 %v3587_v42  ;;  %v605_v8 = vmul.f32 %v4025_v17, %v4025_v17  ;;  %v1512_v36 = vadd.f32 %v1495_v29, %v1470_v7  ;;  %v1456_v7 = vrot.slane %v1440_v40, 1 }
 0x151   : > { %v597_v16 = vrot.slane %v596_v54, 4 }
 0x152   : > { %v1329_v9 = vpop.permute.xlu2 %1328  ;;  %v1623_v2 = vadd.f32 %v3938_v10, %v1512_v36  ;;  %v1061_v10 = vsel %vm260_vm0, %v1058_v24, %v1060_v15  ;;  %v4090_v24 = vmul.f32 %v3643_v22, %v3985_v21  ;;  %v1457_v36 = vsel %vm260_vm0, %v1454_v51, %v1456_v7 }
 0x153   : > { %v598_v59 = vadd.f32 %v597_v16, %v596_v54  ;;  %v1471_v54 = vadd.f32 %v1455_v12, %v1429_v18  ;;  %v4037_v25 = vadd.f32 %v1329_v9, %v1228_v14  ;;  %v4064_v18 = vmul.f32 %v3643_v22, %v3970_v63 }
 0x154   : > { %v1035_v14 = vmul.f32 %v3624_v58, %v3966_v41  ;;  %v1500_v51 = vrot.slane %v4090_v24, 2 }
 0x155   : > { %v599_v56 = vrot.slane %v598_v59, 2  ;;  %v1513_v55 = vadd.f32 %v1497_v48, %v1471_v54  ;;  %v1482_v54 = vmul.f32 %v3624_v58, %v3985_v21  ;;  %v1458_v31 = vrot.slane %v4064_v18, 1 }
 0x156   : > { %v4043_v3 = vpop.f32.mrf.mxu0 }
 0x157   : > { %v600_v26 = vadd.f32 %v599_v56, %v598_v59  ;;  %v4047_v59 = vmul.f32 %v3643_v22, %v3946_v23  ;;  %v1086_v56 = vmul.f32 %v3624_v58, %v3951_v30  ;;  %v1624_v20 = vadd.f32 %v3936_v6, %v1513_v55 }
 0x158   : > { %v1076_v55 = vadd.f32 %v1061_v10, %v1034_v11  ;;  %v1459_v28 = vsel %vm260_vm0, %v1456_v7, %v1458_v31 }
 0x159   : > { %v601_v53 = vrot.slane %v600_v26, 1 }
 0x15a   : > { %v4027_v33 = vpop.permute.xlu2 %1219 }
 0x15b   : > { %v602_v1 = vadd.f32 %v601_v53, %v600_v26  ;;  %v1062_v26 = vrot.slane %v4047_v59, 1  ;;  %v4071_v53 = vmul.f32 %v3643_v22, %v3951_v30 }
 0x15d   : > { %v604_v16 = vmul.f32 0.0015432099, %v602_v1  ;;  %v1327_v43 = vpop.permute.xlu0 %1326  ;;  %v1102_v1 = vrot.slane %v1086_v56, 2  ;;  %v1063_v29 = vsel %vm260_vm0, %v1060_v15, %v1062_v26  ;;  %v1498_v15 = vrot.slane %v1482_v54, 2 }
 0x15e   : > { %v4041_v13 = vadd.f32 %v1327_v43, %v1227_v52  ;;  %v1104_v43 = vrot.slane %v4071_v53, 2  ;;  %v1077_v56 = vadd.f32 %v1063_v29, %v1035_v14 }
 0x15f   : > { %v606_v61 = vsub.f32 %v604_v16, %v605_v8  ;;  %v1430_v8 = vmul.f32 %v3510_v60, %v3999_v4  ;;  %v4096_v16 = vpop.f32.mrf.mxu0  ;;  %v1431_v60 = vmul.f32 %v3624_v58, %v3999_v4  ;;  %v1499_v58 = vsel %vm303_vm1, %v1496_v47, %v1498_v15 }
 0x160   : > { %v2408_v57 = vpack.c.bf16 %v4037_v25, %v4041_v13  ;;  %v1105_v34 = vsel %vm303_vm1, %v1102_v1, %v1104_v43  ;;  %v1501_v7 = vsel %vm303_vm1, %v1498_v15, %v1500_v51  ;;  %v1047_v15 = vmul.f32 %v3796_v5, %v3946_v23 }
 0x161   : > { %v607_v27 = vmax.f32 %v606_v61, 0.0  ;;  %v1723_v9 = vpop.permute.xlu1 %1722  ;;  %v1119_v54 = vadd.f32 %v1105_v34, %v1077_v56  ;;  %v4144_v34 = vmul.f32 %v3785_v50, %v3951_v30 }
 0x162   : > { %2500 = vst [vmem:[#allocation2 + $0x8] sm:$0xff] %v2408_v57   ;;  %v4053_v39 = vpop.permute.xlu2 %1617  ;;  %v4076_v6 = vadd.f32 %v1723_v9, %v1623_v2  ;;  %v1103_v9 = vsel %vm303_vm1, %v1100_v44, %v1102_v1  ;;  %v1472_v2 = vadd.f32 %v1457_v36, %v1430_v8 }
 0x163   : > { %v4055_v38 = vadd.f32 1e-05, %v607_v27  ;;  %v1118_v11 = vadd.f32 %v1103_v9, %v1076_v55 }
 0x164   : > { %v1514_v14 = vadd.f32 %v1499_v58, %v1472_v2  ;;  %v4149_v58 = vld [vmem:[%s4336_s3] sm:$0x1] }
 0x165   : > { %2620 = vrsqrt.f32 %v4055_v38  ;;  %v1725_v12 = vpop.permute.xlu0 %1724  ;;  %vm615_vm3 = vweird.f32 %v4055_v38  ;;  %v1229_v35 = vadd.f32 %v4027_v33, %v1118_v11  ;;  %v4132_v33 = vld [vmem:[%s4336_s3 + $0x1] sm:$0x1] }
 0x166   : > { %v4078_v52 = vadd.f32 %v1725_v12, %v1624_v20  ;;  %v1473_v12 = vadd.f32 %v1459_v28, %v1431_v60 }
 0x168   : > { %v2423_v48 = vpack.c.bf16 %v4078_v52, %v4076_v6  ;;  %v1515_v47 = vadd.f32 %v1501_v7, %v1473_v12  ;;  %v4163_v12 = vmul.f32 %v3785_v50, %v3970_v63 }
 0x169   : > { %v1222_v37 = vpop.permute.xlu1 %1221  ;;  %v2360_v61 = vld [vmem:[#allocation2 + $0x8] sm:$0xff] }
 0x16a   : > { %2503 = vst [vmem:[#allocation2 + $0x48] sm:$0xff] %v2423_v48   ;;  %v1727_v57 = vpop.permute.xlu2 %1726  ;;  %2018 = vmatmul.bf16.vlgmr.msra.gmra.mxu2 %v2360_v61  ;;  %v1999_v61 = vpop.f32.mrf.mxu0  ;;  %v1230_v9 = vadd.f32 %v1222_v37, %v1119_v54  ;;  %v1046_v37 = vmul.f32 %v3785_v50, %v3946_v23  ;;  %v1626_v2 = vadd.f32 %v4053_v39, %v1515_v47  ;;  %v1066_v23 = vrot.slane %v1047_v15, 1 }
 0x16b   : > { %v2621_v27 = vpop.eup %2620 }
 0x16c   : > { %v610_v40 = vmul.f32 %v2621_v27, %v4055_v38  ;;  %vm616_vm2 = vweird.f32 %v2621_v27  ;;  %v1064_v7 = vrot.slane %v1046_v37, 1 }
 0x16d   : > { %v1616_v44 = vpop.permute.xlu0 %1615  ;;  %vm617_vm4 = vmor %vm615_vm3, %vm616_vm2 }
 0x16e   : > { %v611_v20 = vmul.f32 %v2621_v27, %v610_v40  ;;  %v1625_v60 = vadd.f32 %v1616_v44, %v1514_v14  ;;  %v1106_v14 = vrot.slane %v4144_v34, 2  ;;  %v1065_v37 = vsel %vm260_vm0, %v1062_v26, %v1064_v7 }
 0x16f   : > { %v1443_v26 = vmul.f32 %v3796_v5, %v3970_v63  ;;  %v1460_v63 = vrot.slane %v4163_v12, 1  ;;  %v1433_v12 = vmul.f32 %v3785_v50, %v3999_v4 }
 0x170   : > { %v612_v10 = vmul.f32 0.5, %v611_v20 }
 0x171   : > { %v1331_v29 = vpop.permute.xlu1 %1330  ;;  %v2363_v48 = vld [vmem:[#allocation2 + $0x48] sm:$0xff]  ;;  %v1461_v53 = vsel %vm260_vm0, %v1458_v31, %v1460_v63 }
 0x172   : > { %v613_v8 = vsub.f32 1.5, %v612_v10  ;;  %v937_v1 = vpop.permute.xlu2 %936  ;;  %2033 = vmatmul.bf16.vlgmr.msra.gmra.mxu3 %v2363_v48  ;;  %v971_v10 = vmul.f32 %v3602_v62, %v3602_v62  ;;  %v1067_v62 = vsel %vm260_vm0, %v1064_v7, %v1066_v23  ;;  %v1484_v7 = vmul.f32 %v3785_v50, %v3985_v21 }
 0x173   : > { %v4124_v36 = vadd.f32 %v937_v1, %v3558_v32  ;;  %v4134_v32 = vadd.f32 %v1331_v29, %v1229_v35  ;;  %v1037_v29 = vmul.f32 %v3785_v50, %v3966_v41 }
 0x174   : > { %v614_v55 = vmul.f32 %v2621_v27, %v613_v8 }
 0x175   : > { %v1333_v56 = vpop.permute.xlu0 %1332  ;;  %954 = vadd.xlane.f32.xlu0 %v4124_v36 }
 0x176   : > { %v618_v38 = vsel %vm617_vm4, %v2621_v27, %v614_v55  ;;  %v4136_v40 = vadd.f32 %v1333_v56, %v1230_v9  ;;  %v4151_v27 = vadd.f32 %v1727_v57, %v1625_v60  ;;  %v2001_v60 = vpop.f32.mrf.mxu0 }
 0x177   : > { %v2049_v28 = vmul.f32 %v618_v38, %v4025_v17  ;;  %v1089_v17 = vmul.f32 %v3796_v5, %v3951_v30  ;;  %v1036_v30 = vmul.f32 %v3643_v22, %v3966_v41  ;;  %v2052_v48 = vmul.f32 %v3968_v45, %v618_v38 }
 0x178   : > { %v2413_v44 = vpack.c.bf16 %v4136_v40, %v4134_v32  ;;  %v2053_v35 = vmul.f32 %v4014_v46, %v618_v38  ;;  %v2054_v55 = vmul.f32 %v4043_v3, %v618_v38  ;;  %v2055_v9 = vmul.f32 %v4096_v16, %v618_v38 }
 0x179   : > { %v2050_v39 = vmul.f32 %v2049_v28, %v4132_v33  ;;  %v1729_v20 = vpop.permute.xlu1 %1728  ;;  %v1108_v1 = vrot.slane %v1089_v17, 2  ;;  %v2056_v15 = vmul.f32 %v1999_v61, %v618_v38  ;;  %v2057_v56 = vmul.f32 %v2001_v60, %v618_v38 }
 0x17a   : > { %2501 = vst [vmem:[#allocation2 + $0x38] sm:$0xff] %v2413_v44   ;;  %v4159_v11 = vadd.f32 %v1729_v20, %v1626_v2  ;;  %v4165_v57 = vpop.permute.xlu2 %1619  ;;  %v1079_v61 = vadd.f32 %v1067_v62, %v1037_v29 }
 0x17b   : > { %v2051_v54 = vsub.f32 %v4149_v58, %v2050_v39  ;;  %v1109_v59 = vsel %vm303_vm1, %v1106_v14, %v1108_v1  ;;  %v1462_v1 = vrot.slane %v1443_v26, 1  ;;  %v1764_v26 = vmul.f32 %v4078_v52, %v4078_v52 }
 0x17c   : > { %v2428_v8 = vpack.c.bf16 %v4159_v11, %v4151_v27  ;;  %v1121_v29 = vadd.f32 %v1109_v59, %v1079_v61 }
 0x17d   : > { %v2058_v47 = vperm.slane %v2051_v54, 0  ;;  %v935_v41 = vpop.permute.xlu0 %934  ;;  %977 = vadd.xlane.f32.xlu0 %v971_v10  ;;  %v974_v10 = vmul.f32 %v4124_v36, %v4124_v36  ;;  %v1078_v54 = vadd.f32 %v1065_v37, %v1036_v30 }
 0x17e   : > { %2504 = vst [vmem:[#allocation2 + $0x10] sm:$0xff] %v2428_v8   ;;  %v4187_v45 = vadd.f32 %v935_v41, %v3547_v0 }
 0x17f   : > { %v2059_v28 = vadd.f32 %v2058_v47, %v2052_v48  ;;  %v2060_v46 = vadd.f32 %v2058_v47, %v2053_v35  ;;  %v2061_v2 = vadd.f32 %v2058_v47, %v2054_v55  ;;  %v2062_v3 = vadd.f32 %v2058_v47, %v2055_v9 }
 0x180   : > { %v2063_v34 = vadd.f32 %v2058_v47, %v2056_v15  ;;  %v2064_v16 = vadd.f32 %v2058_v47, %v2057_v56  ;;  %v2398_v44 = vpack.c.bf16 %v4124_v36, %v4187_v45  ;;  %952 = vadd.xlane.f32.xlu1 %v4187_v45  ;;  %v1107_v48 = vsel %vm303_vm1, %v1104_v43, %v1106_v14 }
 0x181   : > { %v2438_v38 = vpack.c.bf16 %v2060_v46, %v2059_v28  ;;  %v2443_v0 = vpack.c.bf16 %v2062_v3, %v2061_v2  ;;  %v1224_v23 = vpop.permute.xlu1 %1223  ;;  %v2361_v17 = vld [vmem:[#allocation2 + $0x38] sm:$0xff]  ;;  %v1485_v36 = vmul.f32 %v3796_v5, %v3985_v21  ;;  %v1432_v35 = vmul.f32 %v3643_v22, %v3999_v4 }
 0x182   : > { %v2448_v39 = vpack.c.bf16 %v2064_v16, %v2063_v34  ;;  %2498 = vst [vmem:[#allocation2 + $0x50] sm:$0xff] %v2398_v44   ;;  %v1337_v20 = vpop.permute.xlu2 %1336  ;;  %2023 = vmatmul.bf16.gmra.mxu2 %v2361_v17  ;;  %v1120_v30 = vadd.f32 %v1107_v48, %v1078_v54  ;;  %v1502_v43 = vrot.slane %v1484_v7, 2  ;;  %v1463_v14 = vsel %vm260_vm0, %v1460_v63, %v1462_v1 }
 0x183   : > { %2439 = vst [vmem:[%s4199_s28] sm:$0xff] %v2438_v38   ;;  %v1504_v55 = vrot.slane %v1485_v36, 2  ;;  %v1474_v22 = vadd.f32 %v1461_v53, %v1432_v35  ;;  %v1475_v56 = vadd.f32 %v1463_v14, %v1433_v12  ;;  %v972_v2 = vmul.f32 %v3587_v42, %v3587_v42 }
 0x184   : > { %2506 = vst [vmem:[%s4199_s28 + $0x8] sm:$0xff] %v2443_v0   ;;  %v1231_v41 = vadd.f32 %v1224_v23, %v1120_v30  ;;  %v1503_v50 = vsel %vm303_vm1, %v1500_v51, %v1502_v43  ;;  %v1368_v23 = vmul.f32 %v4037_v25, %v4037_v25  ;;  %v973_v59 = vmul.f32 %v4187_v45, %v4187_v45 }
 0x185   : > { %2507 = vst [vmem:[%s4199_s28 + $0x10] sm:$0xff] %v2448_v39   ;;  %v1226_v8 = vpop.permute.xlu0 %1225  ;;  %983 = vadd.xlane.f32.xlu0 %v974_v10  ;;  %v2364_v62 = vld [vmem:[#allocation2 + $0x10] sm:$0xff]  ;;  %v1505_v4 = vsel %vm303_vm1, %v1502_v43, %v1504_v55  ;;  %v1516_v37 = vadd.f32 %v1503_v50, %v1474_v22  ;;  %v1765_v10 = vmul.f32 %v4151_v27, %v4151_v27 }
 0x186   : > { %2038 = vmatmul.bf16.gmra.mxu3 %v2364_v62  ;;  %v1232_v47 = vadd.f32 %v1226_v8, %v1121_v29  ;;  %v1517_v28 = vadd.f32 %v1505_v4, %v1475_v56  ;;  %v1369_v7 = vmul.f32 %v4134_v32, %v4134_v32 }
 0x187   : > { %v1627_v24 = vadd.f32 %v4165_v57, %v1516_v37 }
 0x188   : > { %v4223_v15 = vadd.f32 %v1337_v20, %v1232_v47  ;;  %v1370_v20 = vmul.f32 %v4136_v40, %v4136_v40 }
 0x189   : > { %v1622_v9 = vpop.permute.xlu1 %1621  ;;  %v2358_v60 = vld [vmem:[#allocation2 + $0x50] sm:$0xff] }
 0x18a   : > { %v939_v5 = vpop.permute.xlu2 %938  ;;  %2008 = vmatmul.bf16.gmra.mxu1 %v2358_v60  ;;  %v1628_v3 = vadd.f32 %v1622_v9, %v1517_v28 }
 0x18b   : > { %v946_v21 = vadd.f32 %v939_v5, %v3492_v49 }
 0x18d   : > { %v1335_v18 = vpop.permute.xlu0 %1334  ;;  %1344 = vadd.xlane.f32.xlu0 %v4041_v13  ;;  %956 = vadd.xlane.f32.xlu2 %v946_v21  ;;  %v975_v42 = vmul.f32 %v946_v21, %v946_v21 }
 0x18e   : > { %v1342_v31 = vadd.f32 %v1335_v18, %v1231_v41  ;;  %v2004_v18 = vpop.f32.mrf.mxu1 }
 0x190   : > { %v2418_v49 = vpack.c.bf16 %v4223_v15, %v1342_v31 }
 0x191   : > { %v1731_v46 = vpop.permute.xlu1 %1730 }
 0x192   : > { %2502 = vst [vmem:[#allocation2 + $0x28] sm:$0xff] %v2418_v49   ;;  %v1738_v34 = vadd.f32 %v1731_v46, %v1627_v24 }
 0x194   : > { %v1767_v45 = vmul.f32 %v1738_v34, %v1738_v34 }
 0x195   : > { %v1733_v51 = vpop.permute.xlu0 %1732  ;;  %1742 = vadd.xlane.f32.xlu0 %v4078_v52  ;;  %979 = vadd.xlane.f32.xlu2 %v972_v2  ;;  %v1367_v52 = vmul.f32 %v4041_v13, %v4041_v13  ;;  %v1371_v13 = vmul.f32 %v1342_v31, %v1342_v31 }
 0x196   : > { %v1739_v16 = vadd.f32 %v1733_v51, %v1628_v3 }
 0x198   : > { %v2433_v44 = vpack.c.bf16 %v1739_v16, %v1738_v34  ;;  %v1768_v54 = vmul.f32 %v1739_v16, %v1739_v16 }
 0x199   : > { %v941_v61 = vpop.permute.xlu1 %940  ;;  %v2362_v38 = vld [vmem:[#allocation2 + $0x28] sm:$0xff] }
 0x19a   : > { %2505 = vst [vmem:[#allocation2 + $0x40] sm:$0xff] %v2433_v44   ;;  %v947_v0 = vadd.f32 %v941_v61, %v3593_v19  ;;  %2028 = vmatmul.bf16.gmra.mxu2 %v2362_v38  ;;  %v2006_v44 = vpop.f32.mrf.mxu1 }
 0x19c   : > { %v2403_v17 = vpack.c.bf16 %v947_v0, %v946_v21  ;;  %958 = vadd.xlane.f32.xlu1 %v947_v0  ;;  %v976_v39 = vmul.f32 %v947_v0, %v947_v0 }
 0x19d   : > { %1375 = vadd.xlane.f32.xlu0 %v1368_v23  ;;  %985 = vadd.xlane.f32.xlu2 %v975_v42 }
 0x19e   : > { %2499 = vst [vmem:[#allocation2 + $0x20] sm:$0xff] %v2403_v17  }
 0x1a1   : > { %v2365_v57 = vld [vmem:[#allocation2 + $0x40] sm:$0xff] }
 0x1a2   : > { %2043 = vmatmul.bf16.gmra.mxu3 %v2365_v57 }
 0x1a4   : > { %981 = vadd.xlane.f32.xlu1 %v973_v59 }
 0x1a5   : > { %1771 = vadd.xlane.f32.xlu0 %v1764_v26  ;;  %1346 = vadd.xlane.f32.xlu2 %v4037_v25  ;;  %v2359_v19 = vld [vmem:[#allocation2 + $0x20] sm:$0xff]  ;;  %v1763_v25 = vmul.f32 %v4076_v6, %v4076_v6 }
 0x1a6   : > { %2013 = vmatmul.bf16.gmra.mxu1 %v2359_v19 }
 0x1ac   : > { %987 = vadd.xlane.f32.xlu1 %v976_v39 }
 0x1ad   : > { %1746 = vadd.xlane.f32.xlu0 %v4159_v11  ;;  %1348 = vadd.xlane.f32.xlu2 %v4134_v32 }
 0x1b4   : > { %1740 = vadd.xlane.f32.xlu1 %v4076_v6  ;;  %v1372_v6 = vmul.f32 %v4223_v15, %v4223_v15 }
 0x1b5   : > { %1379 = vadd.xlane.f32.xlu0 %v1370_v20  ;;  %1744 = vadd.xlane.f32.xlu2 %v4151_v27 }
 0x1bc   : > { %1373 = vadd.xlane.f32.xlu1 %v1367_v52 }
 0x1bd   : > { %1354 = vadd.xlane.f32.xlu0 %v4223_v15  ;;  %1350 = vadd.xlane.f32.xlu2 %v4136_v40  ;;  %v1766_v40 = vmul.f32 %v4159_v11, %v4159_v11 }
 0x1c0   : > { %v949_v27 = vpop.xlane.xlu0 %948 }
 0x1c3   : > { %v951_v63 = vpop.xlane.xlu2 %950 }
 0x1c4   : > { %1769 = vadd.xlane.f32.xlu1 %v1763_v25  ;;  %v960_v1 = vadd.f32 %v951_v63, %v949_v27 }
 0x1c5   : > { %1777 = vadd.xlane.f32.xlu0 %v1767_v45  ;;  %1773 = vadd.xlane.f32.xlu2 %v1765_v10 }
 0x1cc   : > { %1377 = vadd.xlane.f32.xlu1 %v1369_v7 }
 0x1cd   : > { %1748 = vadd.xlane.f32.xlu2 %v1738_v34 }
 0x1d4   : > { %1352 = vadd.xlane.f32.xlu1 %v1342_v31 }
 0x1d5   : > { %1381 = vadd.xlane.f32.xlu2 %v1371_v13 }
 0x1dc   : > { %1775 = vadd.xlane.f32.xlu1 %v1766_v40 }
 0x1dd   : > { %1383 = vadd.xlane.f32.xlu2 %v1372_v6 }
 0x1e4   : > { %1750 = vadd.xlane.f32.xlu1 %v1739_v16 }
 0x1e8   : > { %v955_v29 = vpop.xlane.xlu0 %954 }
 0x1ec   : > { %1779 = vadd.xlane.f32.xlu1 %v1768_v54 }
 0x1f0   : > { %v978_v32 = vpop.xlane.xlu0 %977 }
 0x1f3   : > { %v953_v62 = vpop.xlane.xlu1 %952 }
 0x1f4   : > { %v961_v36 = vadd.f32 %v960_v1, %v953_v62 }
 0x1f6   : > { %v962_v30 = vadd.f32 %v961_v36, %v955_v29 }
 0x1f8   : > { %v984_v8 = vpop.xlane.xlu0 %983 }
 0x200   : > { %v957_v48 = vpop.xlane.xlu2 %956  ;;  %v1345_v11 = vpop.xlane.xlu0 %1344 }
 0x201   : > { %v963_v47 = vadd.f32 %v962_v30, %v957_v48 }
 0x207   : > { %v2009_v19 = vpop.f32.mrf.mxu1 }
 0x208   : > { %v980_v35 = vpop.xlane.xlu2 %979  ;;  %v4263_v5 = vpop.xlane.xlu0 %1742 }
 0x209   : > { %v989_v55 = vadd.f32 %v980_v35, %v978_v32 }
 0x20f   : > { %v959_v12 = vpop.xlane.xlu1 %958  ;;  %v2011_v7 = vpop.f32.mrf.mxu1 }
 0x210   : > { %v964_v53 = vadd.f32 %v963_v47, %v959_v12  ;;  %v986_v43 = vpop.xlane.xlu2 %985  ;;  %v1376_v49 = vpop.xlane.xlu0 %1375 }
 0x212   : > { %v965_v14 = vrot.slane %v964_v53, 4 }
 0x214   : > { %v966_v9 = vadd.f32 %v965_v14, %v964_v53 }
 0x216   : > { %v967_v41 = vrot.slane %v966_v9, 2 }
 0x217   : > { %v982_v60 = vpop.xlane.xlu1 %981 }
 0x218   : > { %v990_v21 = vadd.f32 %v989_v55, %v982_v60  ;;  %v1347_v22 = vpop.xlane.xlu2 %1346  ;;  %v968_v56 = vadd.f32 %v967_v41, %v966_v9  ;;  %v4267_v0 = vpop.xlane.xlu0 %1771 }
 0x219   : > { %v1356_v63 = vadd.f32 %v1347_v22, %v1345_v11 }
 0x21a   : > { %v991_v15 = vadd.f32 %v990_v21, %v984_v8  ;;  %v969_v28 = vrot.slane %v968_v56, 1 }
 0x21c   : > { %v992_v50 = vadd.f32 %v991_v15, %v986_v43  ;;  %v970_v24 = vadd.f32 %v969_v28, %v968_v56 }
 0x21e   : > { %v1000_v61 = vmul.f32 0.0015432099, %v970_v24 }
 0x21f   : > { %v988_v4 = vpop.xlane.xlu1 %987 }
 0x220   : > { %v993_v31 = vadd.f32 %v992_v50, %v988_v4  ;;  %v1349_v37 = vpop.xlane.xlu2 %1348  ;;  %v1002_v42 = vmul.f32 %v1000_v61, %v1000_v61  ;;  %v4269_v52 = vpop.xlane.xlu0 %1746 }
 0x221   : > { %v1357_v8 = vadd.f32 %v1356_v63, %v1349_v37 }
 0x222   : > { %v994_v46 = vrot.slane %v993_v31, 4 }
 0x223   : > { %v2014_v48 = vpop.f32.mrf.mxu1 }
 0x224   : > { %v995_v2 = vadd.f32 %v994_v46, %v993_v31 }
 0x226   : > { %v996_v3 = vrot.slane %v995_v2, 2 }
 0x227   : > { %v1741_v34 = vpop.xlane.xlu1 %1740 }
 0x228   : > { %v997_v51 = vadd.f32 %v996_v3, %v995_v2  ;;  %v4265_v16 = vpop.xlane.xlu2 %1744  ;;  %v1380_v6 = vpop.xlane.xlu0 %1379  ;;  %v1752_v21 = vadd.f32 %v4263_v5, %v1741_v34 }
 0x22a   : > { %v998_v38 = vrot.slane %v997_v51, 1  ;;  %v1753_v5 = vadd.f32 %v1752_v21, %v4265_v16 }
 0x22b   : > { %v2016_v31 = vpop.f32.mrf.mxu1 }
 0x22c   : > { %v999_v23 = vadd.f32 %v998_v38, %v997_v51 }
 0x22e   : > { %v1001_v17 = vmul.f32 0.0015432099, %v999_v23  ;;  %v4277_v23 = vpop.f32.mrf.mxu2 }
 0x22f   : > { %v1374_v59 = vpop.xlane.xlu1 %1373 }
 0x230   : > { %v1003_v57 = vsub.f32 %v1001_v17, %v1002_v42  ;;  %v1351_v26 = vpop.xlane.xlu2 %1350  ;;  %v1385_v36 = vadd.f32 %v1376_v49, %v1374_v59  ;;  %v1355_v55 = vpop.xlane.xlu0 %1354 }
 0x231   : > { %v1358_v35 = vadd.f32 %v1357_v8, %v1351_v26 }
 0x232   : > { %v1004_v39 = vmax.f32 %v1003_v57, 0.0 }
 0x234   : > { %v1005_v20 = vadd.f32 1e-05, %v1004_v39 }
 0x236   : > { %2622 = vrsqrt.f32 %v1005_v20  ;;  %vm1012_vm6 = vweird.f32 %v1005_v20  ;;  %v2021_v8 = vpop.f32.mrf.mxu2 }
 0x237   : > { %v1770_v25 = vpop.xlane.xlu1 %1769 }
 0x238   : > { %v4271_v45 = vpop.xlane.xlu2 %1773  ;;  %v1781_v39 = vadd.f32 %v4267_v0, %v1770_v25  ;;  %v1778_v0 = vpop.xlane.xlu0 %1777 }
 0x23c   : > { %v2623_v10 = vpop.eup %2622 }
 0x23d   : > { %v1007_v13 = vmul.f32 %v2623_v10, %v1005_v20  ;;  %vm1013_vm5 = vweird.f32 %v2623_v10  ;;  %v1754_v20 = vadd.f32 %v1753_v5, %v4269_v52 }
 0x23e   : > { %vm1014_vm7 = vmor %vm1012_vm6, %vm1013_vm5 }
 0x23f   : > { %v1008_v40 = vmul.f32 %v2623_v10, %v1007_v13  ;;  %v1378_v27 = vpop.xlane.xlu1 %1377 }
 0x240   : > { %v1749_v29 = vpop.xlane.xlu2 %1748  ;;  %v1386_v12 = vadd.f32 %v1385_v36, %v1378_v27  ;;  %v1782_v27 = vadd.f32 %v1781_v39, %v4271_v45 }
 0x241   : > { %v1009_v54 = vmul.f32 0.5, %v1008_v40 }
 0x242   : > { %v1387_v41 = vadd.f32 %v1386_v12, %v1380_v6 }
 0x243   : > { %v1010_v32 = vsub.f32 1.5, %v1009_v54 }
 0x245   : > { %v1011_v62 = vmul.f32 %v2623_v10, %v1010_v32 }
 0x247   : > { %v1015_v1 = vsel %vm1014_vm7, %v2623_v10, %v1011_v62  ;;  %v1353_v47 = vpop.xlane.xlu1 %1352 }
 0x248   : > { %v2077_v30 = vmul.f32 %v1015_v1, %v1000_v61  ;;  %v1359_v53 = vadd.f32 %v1358_v35, %v1353_v47  ;;  %v1382_v43 = vpop.xlane.xlu2 %1381  ;;  %v2080_v60 = vmul.f32 %v2004_v18, %v1015_v1  ;;  %v2081_v15 = vmul.f32 %v2006_v44, %v1015_v1 }
 0x249   : > { %v2082_v56 = vmul.f32 %v2009_v19, %v1015_v1  ;;  %v2083_v50 = vmul.f32 %v2011_v7, %v1015_v1  ;;  %v2084_v37 = vmul.f32 %v2014_v48, %v1015_v1  ;;  %v2085_v28 = vmul.f32 %v2016_v31, %v1015_v1 }
 0x24a   : > { %v2078_v14 = vmul.f32 %v2077_v30, %v4132_v33  ;;  %v1360_v9 = vadd.f32 %v1359_v53, %v1355_v55  ;;  %v1388_v46 = vadd.f32 %v1387_v41, %v1382_v43  ;;  %v1755_v7 = vadd.f32 %v1754_v20, %v1749_v29  ;;  %v4285_v43 = vpop.f32.mrf.mxu3 }
 0x24c   : > { %v2079_v11 = vsub.f32 %v4149_v58, %v2078_v14  ;;  %v1361_v22 = vrot.slane %v1360_v9, 4 }
 0x24e   : > { %v2086_v4 = vperm.slane %v2079_v11, 0  ;;  %v1362_v49 = vadd.f32 %v1361_v22, %v1360_v9  ;;  %v2024_v9 = vpop.f32.mrf.mxu2 }
 0x24f   : > { %v1776_v18 = vpop.xlane.xlu1 %1775 }
 0x250   : > { %v2087_v2 = vadd.f32 %v2086_v4, %v2080_v60  ;;  %v2088_v24 = vadd.f32 %v2086_v4, %v2081_v15  ;;  %v2089_v3 = vadd.f32 %v2086_v4, %v2082_v56  ;;  %v2090_v51 = vadd.f32 %v2086_v4, %v2083_v50  ;;  %v1384_v38 = vpop.xlane.xlu2 %1383 }
 0x251   : > { %v2091_v61 = vadd.f32 %v2086_v4, %v2084_v37  ;;  %v2092_v34 = vadd.f32 %v2086_v4, %v2085_v28  ;;  %v1363_v44 = vrot.slane %v1362_v49, 2  ;;  %v1389_v57 = vadd.f32 %v1388_v46, %v1384_v38 }
 0x252   : > { %v2453_v42 = vpack.c.bf16 %v2088_v24, %v2087_v2  ;;  %v2458_v17 = vpack.c.bf16 %v2090_v51, %v2089_v3  ;;  %v1783_v32 = vadd.f32 %v1782_v27, %v1776_v18  ;;  %v2036_v4 = vpop.f32.mrf.mxu3 }
 0x253   : > { %v2463_v59 = vpack.c.bf16 %v2092_v34, %v2091_v61  ;;  %v1364_v26 = vadd.f32 %v1363_v44, %v1362_v49  ;;  %v1390_v19 = vrot.slane %v1389_v57, 4 }
 0x254   : > { %2508 = vst [vmem:[%s4199_s28 + $0x18] sm:$0xff] %v2453_v42   ;;  %v1784_v35 = vadd.f32 %v1783_v32, %v1778_v0 }
 0x255   : > { %2509 = vst [vmem:[%s4199_s28 + $0x20] sm:$0xff] %v2458_v17   ;;  %v1365_v10 = vrot.slane %v1364_v26, 1  ;;  %v1391_v16 = vadd.f32 %v1390_v19, %v1389_v57 }
 0x256   : > { %2510 = vst [vmem:[%s4199_s28 + $0x28] sm:$0xff] %v2463_v59   ;;  %v2026_v28 = vpop.f32.mrf.mxu2 }
 0x257   : > { %v1366_v13 = vadd.f32 %v1365_v10, %v1364_v26  ;;  %v1392_v40 = vrot.slane %v1391_v16, 2  ;;  %v1751_v6 = vpop.xlane.xlu1 %1750 }
 0x258   : > { %v1756_v54 = vadd.f32 %v1755_v7, %v1751_v6 }
 0x259   : > { %v1393_v63 = vadd.f32 %v1392_v40, %v1391_v16  ;;  %v1396_v62 = vmul.f32 0.0015432099, %v1366_v13 }
 0x25a   : > { %v1757_v48 = vrot.slane %v1756_v54, 4  ;;  %v2039_v61 = vpop.f32.mrf.mxu3 }
 0x25b   : > { %v1394_v1 = vrot.slane %v1393_v63, 1  ;;  %v1398_v30 = vmul.f32 %v1396_v62, %v1396_v62 }
 0x25c   : > { %v1758_v36 = vadd.f32 %v1757_v48, %v1756_v54 }
 0x25d   : > { %v1395_v25 = vadd.f32 %v1394_v1, %v1393_v63 }
 0x25e   : > { %v1759_v52 = vrot.slane %v1758_v36, 2  ;;  %v2029_v44 = vpop.f32.mrf.mxu2 }
 0x25f   : > { %v1397_v47 = vmul.f32 0.0015432099, %v1395_v25  ;;  %v1780_v29 = vpop.xlane.xlu1 %1779 }
 0x260   : > { %v1760_v12 = vadd.f32 %v1759_v52, %v1758_v36  ;;  %v1785_v53 = vadd.f32 %v1784_v35, %v1780_v29 }
 0x261   : > { %v1399_v45 = vsub.f32 %v1397_v47, %v1398_v30 }
 0x262   : > { %v1761_v14 = vrot.slane %v1760_v12, 1  ;;  %v1786_v55 = vrot.slane %v1785_v53, 4  ;;  %v2041_v26 = vpop.f32.mrf.mxu3 }
 0x263   : > { %v1400_v11 = vmax.f32 %v1399_v45, 0.0 }
 0x264   : > { %v1787_v60 = vadd.f32 %v1786_v55, %v1785_v53  ;;  %v1762_v22 = vadd.f32 %v1761_v14, %v1760_v12 }
 0x265   : > { %v1401_v21 = vadd.f32 1e-05, %v1400_v11 }
 0x266   : > { %v1788_v41 = vrot.slane %v1787_v60, 2  ;;  %v1792_v56 = vmul.f32 0.0015432099, %v1762_v22  ;;  %v2031_v16 = vpop.f32.mrf.mxu2 }
 0x267   : > { %2624 = vrsqrt.f32 %v1401_v21  ;;  %vm1408_vm9 = vweird.f32 %v1401_v21 }
 0x268   : > { %v1789_v15 = vadd.f32 %v1788_v41, %v1787_v60  ;;  %v1794_v46 = vmul.f32 %v1792_v56, %v1792_v56 }
 0x26a   : > { %v1790_v50 = vrot.slane %v1789_v15, 1  ;;  %v2044_v35 = vpop.f32.mrf.mxu3 }
 0x26c   : > { %v1791_v31 = vadd.f32 %v1790_v50, %v1789_v15 }
 0x26d   : > { %v2625_v37 = vpop.eup %2624 }
 0x26e   : > { %v1403_v49 = vmul.f32 %v2625_v37, %v1401_v21  ;;  %v1793_v2 = vmul.f32 0.0015432099, %v1791_v31  ;;  %vm1409_vm8 = vweird.f32 %v2625_v37 }
 0x26f   : > { %vm1410_vm10 = vmor %vm1408_vm9, %vm1409_vm8 }
 0x270   : > { %v1404_v24 = vmul.f32 %v2625_v37, %v1403_v49  ;;  %v1795_v3 = vsub.f32 %v1793_v2, %v1794_v46 }
 0x272   : > { %v1405_v51 = vmul.f32 0.5, %v1404_v24  ;;  %v1796_v18 = vmax.f32 %v1795_v3, 0.0  ;;  %v2046_v14 = vpop.f32.mrf.mxu3 }
 0x274   : > { %v1406_v5 = vsub.f32 1.5, %v1405_v51  ;;  %v1797_v34 = vadd.f32 1e-05, %v1796_v18 }
 0x276   : > { %v1407_v38 = vmul.f32 %v2625_v37, %v1406_v5  ;;  %2626 = vrsqrt.f32 %v1797_v34  ;;  %vm1804_vm12 = vweird.f32 %v1797_v34 }
 0x278   : > { %v1411_v42 = vsel %vm1410_vm10, %v2625_v37, %v1407_v38 }
 0x279   : > { %v2105_v17 = vmul.f32 %v1411_v42, %v1396_v62  ;;  %v2108_v20 = vmul.f32 %v4277_v23, %v1411_v42  ;;  %v2109_v10 = vmul.f32 %v2021_v8, %v1411_v42  ;;  %v2110_v7 = vmul.f32 %v2024_v9, %v1411_v42 }
 0x27a   : > { %v2111_v13 = vmul.f32 %v2026_v28, %v1411_v42  ;;  %v2112_v27 = vmul.f32 %v2029_v44, %v1411_v42  ;;  %v2113_v54 = vmul.f32 %v2031_v16, %v1411_v42 }
 0x27b   : > { %v2106_v57 = vmul.f32 %v2105_v17, %v4132_v33 }
 0x27c   : > { %v2627_v59 = vpop.eup %2626 }
 0x27d   : > { %v2107_v19 = vsub.f32 %v4149_v58, %v2106_v57  ;;  %v1799_v39 = vmul.f32 %v2627_v59, %v1797_v34  ;;  %vm1805_vm11 = vweird.f32 %v2627_v59 }
 0x27e   : > { %vm1806_vm13 = vmor %vm1804_vm12, %vm1805_vm11 }
 0x27f   : > { %v2114_v40 = vperm.slane %v2107_v19, 0  ;;  %v1800_v6 = vmul.f32 %v2627_v59, %v1799_v39 }
 0x281   : > { %v2115_v63 = vadd.f32 %v2114_v40, %v2108_v20  ;;  %v2116_v32 = vadd.f32 %v2114_v40, %v2109_v10  ;;  %v2117_v48 = vadd.f32 %v2114_v40, %v2110_v7  ;;  %v2118_v62 = vadd.f32 %v2114_v40, %v2111_v13 }
 0x282   : > { %v2119_v1 = vadd.f32 %v2114_v40, %v2112_v27  ;;  %v2120_v36 = vadd.f32 %v2114_v40, %v2113_v54  ;;  %v1801_v0 = vmul.f32 0.5, %v1800_v6 }
 0x283   : > { %v2468_v23 = vpack.c.bf16 %v2116_v32, %v2115_v63  ;;  %v2473_v8 = vpack.c.bf16 %v2118_v62, %v2117_v48 }
 0x284   : > { %v2478_v25 = vpack.c.bf16 %v2120_v36, %v2119_v1  ;;  %v1802_v52 = vsub.f32 1.5, %v1801_v0 }
 0x285   : > { %2511 = vst [vmem:[%s4199_s28 + $0x30] sm:$0xff] %v2468_v23  }
 0x286   : > { %2512 = vst [vmem:[%s4199_s28 + $0x38] sm:$0xff] %v2473_v8   ;;  %v1803_v30 = vmul.f32 %v2627_v59, %v1802_v52 }
 0x287   : > { %2513 = vst [vmem:[%s4199_s28 + $0x40] sm:$0xff] %v2478_v25  }
 0x288   : > { %v1807_v47 = vsel %vm1806_vm13, %v2627_v59, %v1803_v30 }
 0x289   : > { %v2133_v29 = vmul.f32 %v1807_v47, %v1792_v56  ;;  %v2136_v45 = vmul.f32 %v4285_v43, %v1807_v47  ;;  %v2137_v55 = vmul.f32 %v2036_v4, %v1807_v47  ;;  %v2138_v9 = vmul.f32 %v2039_v61, %v1807_v47 }
 0x28a   : > { %v2139_v11 = vmul.f32 %v2041_v26, %v1807_v47  ;;  %v2140_v21 = vmul.f32 %v2044_v35, %v1807_v47  ;;  %v2141_v22 = vmul.f32 %v2046_v14, %v1807_v47 }
 0x28b   : > { %v2134_v12 = vmul.f32 %v2133_v29, %v4132_v33 }
 0x28d   : > { %v2135_v53 = vsub.f32 %v4149_v58, %v2134_v12 }
 0x28f   : > { %v2142_v60 = vperm.slane %v2135_v53, 0 }
 0x291   : > { %v2143_v33 = vadd.f32 %v2142_v60, %v2136_v45  ;;  %v2144_v41 = vadd.f32 %v2142_v60, %v2137_v55  ;;  %v2145_v58 = vadd.f32 %v2142_v60, %v2138_v9  ;;  %v2146_v15 = vadd.f32 %v2142_v60, %v2139_v11 }
 0x292   : > { %v2147_v43 = vadd.f32 %v2142_v60, %v2140_v21  ;;  %v2148_v56 = vadd.f32 %v2142_v60, %v2141_v22 }
 0x293   : > { %v2483_v50 = vpack.c.bf16 %v2144_v41, %v2143_v33  ;;  %v2488_v4 = vpack.c.bf16 %v2146_v15, %v2145_v58 }
 0x294   : > { %v2493_v31 = vpack.c.bf16 %v2148_v56, %v2147_v43 }
 0x295   : > { %2514 = vst [vmem:[%s4199_s28 + $0x48] sm:$0xff] %v2483_v50  }
 0x296   : > { %2515 = vst [vmem:[%s4199_s28 + $0x50] sm:$0xff] %v2488_v4  }
 0x297   : > { %2516 = vst [vmem:[%s4199_s28 + $0x58] sm:$0xff] %v2493_v31  }
 0x298   : > { %2737 = shalt.err (!%p2734_p7)
}
 0x299   : > { %s2795_s27 = smov 64   ;;  %s2796_s20 = smov 4  }
 0x29a   : > { %2554 = dma.vmem_to_hbm [thread:$0]  (%p2860_p5), %s2175_s19, 1536, %s2177_s7, %s2162_s8, %s2795_s27, %s2795_s27, %s2796_s20  }
 0x29b PF: > { %p2576_p8 = scmp.ge.s32.totalorder %s2784_s18, 2  ;;  %s2191_s22 = sand.u32 1, %s2772_s15  }
 0x29c   : > { %s2192_s28 = scalar_lea.sflag [#allocation5], %s2191_s22 }
 0x29d   : > { %p2567_p9 = pnand %p2576_p8, %p2864_p6 }
 0x29f   : > { %p2568_p10 = pneg %p2567_p9 }
 0x2a1   : > { %2767 = dma.done.wait (%p2568_p10), %s2192_s28, 1536  }
 0x2a2   : > { %2769 = vsyncadd (%p2568_p10), %s2192_s28, 4294965760  ;;  %p17_p11 = scmp.ge.s32.totalorder %s2847_s21, 6   ;;  %s4370_s15 = smov %s2776_s16 }
 0x2a3   : > { %s4371_s16 = smov %s2780_s17  ;;  %s4372_s17 = smov %s2858_s24 }
 0x2a4   : > { %s4373_s18 = smov %s2847_s21  ;;  %19 = sbr.rel (!%p17_p11) target bundleno = 6 (0x6), region = 82 }
 0x2a9   :  { %2198 = vsyncpa [#allocation4], 1 }
 0x2aa   :  { %2200 = vsyncpa [#allocation4 + $0x1], 1 }
 0x2ab   :  { %2201 = vsyncpa [#allocation9], 1 }
 0x2ac   :  { %2202 = vsyncpa [#allocation5], 1 }
 0x2ad   :  { %2204 = vsyncpa [#allocation5 + $0x1], 1 }
 0x2ae   :  { %2205 = vsyncpa [#allocation6], 1 }
 0x2af   :  { %2207 = vsyncpa [#allocation6 + $0x1], 1 }

</bundles_post_ra>
